<compile_context>
chip_gen: v6e
topology: v6e:2x2x1
jax: 0.10.0
libtpu: 0.0.40
codegen_flags: <defaults>
</compile_context>

<pallas_src>
import functools

import jax
import jax.numpy as jnp
from jax.experimental import pallas as pl
from jax.experimental.pallas import tpu as pltpu

NUM_SPLITS = 16
SPLIT_PADDING = 3
EPS = 1e-5
KSZ = 3  # kernel_size = 3 in every spatial dim


def _split_conv_kernel(valid_ref, x_ref, w_ref, m_ref, b_ref, a_ref, o_ref, *,
                       width, dw, hs_max, ss, pad):
    # valid_ref: SMEM (NUM_SPLITS,) int32  valid row count (Hs_i * D*W) per split
    # x_ref:  (1, 1, Cin_p, Hflat)  zero-padded channels-first tile, (h,d,w)-flat
    # w_ref:  (27, Cout, Cin_p)     conv weight, tap order (kh, kd, kw)
    # m_ref:  (9, P)                {0,1} masks = implicit conv zero-pad in D/W
    # b_ref:  (Cout, 1)             conv bias
    # a_ref:  SMEM (1, 1)           PReLU weight (single shared parameter)
    # o_ref:  (1, 1, Cout, ss*dw)   cropped, normalized, activated output
    s = pl.program_id(0)
    p = hs_max * dw
    cout = o_ref.shape[2]

    # --- Conv3d as 27 accumulated matmuls over shifted taps (in-kernel im2col).
    acc = jnp.zeros((cout, p), jnp.float32)
    for kh in range(KSZ):
        for kd in range(KSZ):
            for kw in range(KSZ):
                k = (kh * KSZ + kd) * KSZ + kw
                # flat read index for output (h,d,w):
                #   (h + kh + 1)*DW + (d + kd - 1)*W + (w + kw - 1)
                start = (kh + 1) * dw + (kd - 1) * width + (kw - 1)
                tap = x_ref[0, 0, :, pl.ds(start, p)]          # (Cin_p, P)
                if not (kd == 1 and kw == 1):                  # center mask == 1
                    mk = m_ref[pl.ds(kd * KSZ + kw, 1), :]     # (1, P)
                    tap = tap * mk
                acc = acc + jnp.dot(w_ref[k], tap,
                                    preferred_element_type=jnp.float32)
    y = acc + b_ref[...]                                       # (Cout, P)

    # --- InstanceNorm3d over this split's valid rows only (biased var, no affine).
    cnt = valid_ref[s]                                         # Hs_i * D*W
    lane = jax.lax.broadcasted_iota(jnp.int32, (1, p), 1)
    vmask = (lane < cnt).astype(jnp.float32)                   # (1, P)
    inv = 1.0 / cnt.astype(jnp.float32)
    mean = jnp.sum(y * vmask, axis=-1, keepdims=True) * inv    # (Cout, 1)
    cen = (y - mean) * vmask
    var = jnp.sum(cen * cen, axis=-1, keepdims=True) * inv
    z = (y - mean) * jax.lax.rsqrt(var + EPS)

    # --- PReLU (single shared weight from SMEM).
    alpha = a_ref[0, 0]
    z = jnp.where(z >= 0.0, z, z * alpha)

    # --- Crop the split-overlap halo (rows are (h,d,w)-ordered, h outermost).
    p_out = ss * dw

    @pl.when(s == 0)
    def _():
        o_ref[0, 0] = z[:, :p_out]

    @pl.when(s > 0)
    def _():
        o_ref[0, 0] = z[:, pad * dw:pad * dw + p_out]


def split_convolution_v1(x, weight, bias, prelu_w):
    """x: (N, Cin, D, H, W) NCDHW. weight: (Cout, Cin, 3, 3, 3). bias: (Cout,)."""
    n, cin, d, h, w = x.shape
    cout = weight.shape[0]
    assert d >= 2, "flattened (h,d,w) tap addressing needs D >= 2"
    assert h >= NUM_SPLITS
    ss = h // NUM_SPLITS
    pad = SPLIT_PADDING                     # stride == 1 -> overlap stays 3
    assert ss >= pad, "split size must cover the overlap halo (H >= 48)"
    last_pad = h % ss
    dw = d * w

    # Split geometry identical to the PyTorch module.
    bounds = []
    for i in range(NUM_SPLITS):
        lo = i * ss - (0 if i == 0 else pad)
        hi = (i + 1) * ss + (pad if i != NUM_SPLITS - 1 else last_pad)
        bounds.append((lo, hi))
    hs_max = max(hi - lo for lo, hi in bounds)
    hpad = hs_max + 4                        # 2 zero rows each side along H
    hflat = hpad * dw
    p = hs_max * dw
    p_out = ss * dw

    # Sublane-align the contraction (channel) dim.
    cin_p = ((cin + 7) // 8) * 8
    xh = jnp.transpose(x, (0, 1, 3, 2, 4)).astype(jnp.float32)   # (N,Cin,H,D,W)
    wt = weight.astype(jnp.float32)
    if cin_p != cin:
        xh = jnp.pad(xh, ((0, 0), (0, cin_p - cin), (0, 0), (0, 0), (0, 0)))
        wt = jnp.pad(wt, ((0, 0), (0, cin_p - cin), (0, 0), (0, 0), (0, 0)))

    # Stacked per-split input tiles: (S, N, Cin_p, Hflat), zero padded along H
    # (2 halo rows each side + phantom rows up to hs_max), (h, d, w) row-major.
    tiles = []
    for lo, hi in bounds:
        hs = hi - lo
        xs = jnp.pad(xh[:, :, lo:hi],
                     ((0, 0), (0, 0), (2, hpad - hs - 2), (0, 0), (0, 0)))
        tiles.append(xs.reshape(n, cin_p, hflat))
    x_stack = jnp.stack(tiles, axis=0)

    # Conv weight -> (27, Cout, Cin_p) in (kh, kd, kw) tap order.
    w_stack = jnp.transpose(wt, (3, 2, 4, 0, 1)).reshape(KSZ ** 3, cout, cin_p)

    # (kd, kw) tap masks emulating the conv's zero padding along D and W.
    j = jnp.arange(p, dtype=jnp.int32)
    d_idx = (j // w) % d
    w_idx = j % w
    rows = []
    for kd in range(KSZ):
        for kw in range(KSZ):
            di = d_idx + (kd - 1)
            wi = w_idx + (kw - 1)
            rows.append(((di >= 0) & (di < d) & (wi >= 0) & (wi < w))
                        .astype(jnp.float32))
    masks = jnp.stack(rows, axis=0)                              # (9, P)

    valid_rows = jnp.asarray([(hi - lo) * dw for lo, hi in bounds], jnp.int32)
    b_col = bias.reshape(cout, 1).astype(jnp.float32)
    a_sc = jnp.asarray(prelu_w, jnp.float32).reshape(1, 1)

    kernel = functools.partial(_split_conv_kernel, width=w, dw=dw,
                               hs_max=hs_max, ss=ss, pad=pad)
    out = pl.pallas_call(
        kernel,
        out_shape=jax.ShapeDtypeStruct((NUM_SPLITS, n, cout, p_out), jnp.float32),
        grid_spec=pltpu.PrefetchScalarGridSpec(
            num_scalar_prefetch=1,
            grid=(NUM_SPLITS, n),
            in_specs=[
                pl.BlockSpec((1, 1, cin_p, hflat), lambda s, b, vr: (s, b, 0, 0)),
                pl.BlockSpec((KSZ ** 3, cout, cin_p), lambda s, b, vr: (0, 0, 0)),
                pl.BlockSpec((KSZ * KSZ, p), lambda s, b, vr: (0, 0)),
                pl.BlockSpec((cout, 1), lambda s, b, vr: (0, 0)),
                pl.BlockSpec(memory_space=pltpu.MemorySpace.SMEM),
            ],
            out_specs=pl.BlockSpec((1, 1, cout, p_out),
                                   lambda s, b, vr: (s, b, 0, 0)),
        ),
        compiler_params=pltpu.CompilerParams(
            dimension_semantics=("parallel", "parallel"),
            vmem_limit_bytes=32 * 1024 * 1024),
    )(valid_rows, x_stack, w_stack, masks, b_col, a_sc)

    # (S, N, Cout, ss*D*W) -> (N, Cout, D, H, W)
    out = out.reshape(NUM_SPLITS, n, cout, ss, d, w)
    out = jnp.transpose(out, (1, 2, 4, 0, 3, 5))
    return out.reshape(n, cout, d, NUM_SPLITS * ss, w)


def _reference(x, weight, bias, prelu_w):
    # Independent pure-JAX reference mirroring the PyTorch forward semantics.
    n, cin, d, h, w = x.shape
    ss = h // NUM_SPLITS
    pad = SPLIT_PADDING
    last_pad = h % ss
    outs = []
    for i in range(NUM_SPLITS):
        lo = i * ss - (0 if i == 0 else pad)
        hi = (i + 1) * ss + (pad if i != NUM_SPLITS - 1 else last_pad)
        xs = x[:, :, :, lo:hi, :]
        y = jax.lax.conv_general_dilated(
            xs, weight, window_strides=(1, 1, 1),
            padding=((1, 1), (1, 1), (1, 1)),
            dimension_numbers=("NCDHW", "OIDHW", "NCDHW"),
            precision=jax.lax.Precision.HIGHEST)
        y = y + bias.reshape(1, -1, 1, 1, 1)
        mean = y.mean(axis=(2, 3, 4), keepdims=True)
        var = ((y - mean) ** 2).mean(axis=(2, 3, 4), keepdims=True)
        z = (y - mean) / jnp.sqrt(var + EPS)
        z = jnp.where(z >= 0, z, prelu_w * z)
        crop = 0 if i == 0 else pad
        outs.append(z[:, :, :, crop:crop + ss, :])
    return jnp.concatenate(outs, axis=3)


if __name__ == "__main__":
    # N=2, Cin=4, Cout=8, D=4, H=64 (16 splits of 4 with halo 3), W=8.
    key = jax.random.PRNGKey(0)
    kx, kw, kb = jax.random.split(key, 3)
    x = jax.random.normal(kx, (2, 4, 4, 64, 8), dtype=jnp.float32)
    weight = 0.1 * jax.random.normal(kw, (8, 4, 3, 3, 3), dtype=jnp.float32)
    bias = 0.05 * jax.random.normal(kb, (8,), dtype=jnp.float32)
    prelu_w = jnp.float32(0.25)  # nn.PReLU() default init

    out = jax.jit(split_convolution_v1)(x, weight, bias, prelu_w)
    out = jax.block_until_ready(out)
    assert out.shape == (2, 8, 4, 64, 8), out.shape

    ref = _reference(x, weight, bias, prelu_w)
    assert jnp.allclose(out, ref, rtol=5e-4, atol=5e-4), float(
        jnp.max(jnp.abs(out - ref)))

    # TODO(synk): optional bf16 input/weight path (f32 accumulation) for v5e
    # bandwidth, pending numerics validation for the target model.
    print("KERNEL_OK")
</pallas_src>

<mosaic_0001>
module attributes {stable_mosaic.version = 11 : i64} {
  func.func @_split_conv_kernel(%arg0: i32, %arg1: i32, %arg2: memref<16xi32, #tpu.memory_space<smem>>, %arg3: memref<1x1x8x448xf32, #tpu.memory_space<vmem>>, %arg4: memref<27x8x8xf32, #tpu.memory_space<vmem>>, %arg5: memref<9x320xf32, #tpu.memory_space<vmem>>, %arg6: memref<8x1xf32, #tpu.memory_space<vmem>>, %arg7: memref<1x1xf32, #tpu.memory_space<smem>>, %arg8: memref<1x1x8x128xf32, #tpu.memory_space<vmem>>) attributes {dimension_semantics = [#tpu.dimension_semantics<parallel>, #tpu.dimension_semantics<parallel>], iteration_bounds = array<i64: 16, 2>, scalar_prefetch = 1 : i64, scratch_operands = 0 : i64, tpu.core_type = #tpu.core_type<tc>, window_params = [{transform_indices = @transform_0, window_bounds = array<i64: 1, 1, 8, 448>}, {pipeline_mode = #tpu.pipeline_mode<synchronous>, transform_indices = @transform_1, window_bounds = array<i64: 27, 8, 8>}, {pipeline_mode = #tpu.pipeline_mode<synchronous>, transform_indices = @transform_2, window_bounds = array<i64: 9, 320>}, {pipeline_mode = #tpu.pipeline_mode<synchronous>, transform_indices = @transform_3, window_bounds = array<i64: 8, 1>}, {transform_indices = @transform_4, window_bounds = array<i64: 1, 1>}, {transform_indices = @transform_5, window_bounds = array<i64: 1, 1, 8, 128>}]} {
    %cst = arith.constant 0.000000e+00 : f32
    %0 = vector.broadcast %cst : f32 to vector<8x320xf32>
    %c0 = arith.constant 0 : index
    %c0_0 = arith.constant 0 : index
    %c0_1 = arith.constant 0 : index
    %c23 = arith.constant 23 : index
    %1 = vector.load %arg3[%c0, %c0_0, %c0_1, %c23] : memref<1x1x8x448xf32, #tpu.memory_space<vmem>>, vector<1x1x8x320xf32>
    %2 = vector.shape_cast %1 : vector<1x1x8x320xf32> to vector<8x320xf32>
    %c0_2 = arith.constant 0 : index
    %c0_3 = arith.constant 0 : index
    %3 = vector.load %arg5[%c0_2, %c0_3] : memref<9x320xf32, #tpu.memory_space<vmem>>, vector<1x320xf32>
    %4 = vector.broadcast %3 : vector<1x320xf32> to vector<8x320xf32>
    %5 = arith.mulf %2, %4 : vector<8x320xf32>
    %c0_4 = arith.constant 0 : index
    %c0_5 = arith.constant 0 : index
    %c0_6 = arith.constant 0 : index
    %6 = vector.load %arg4[%c0_4, %c0_5, %c0_6] : memref<27x8x8xf32, #tpu.memory_space<vmem>>, vector<1x8x8xf32>
    %7 = vector.shape_cast %6 : vector<1x8x8xf32> to vector<8x8xf32>
    %cst_7 = arith.constant dense<0.000000e+00> : vector<8x320xf32>
    %8 = tpu.matmul %7, %5, %cst_7 {dimension_numbers = #tpu.dot_dimension_numbers<[1], [0], [0], [1], [0, 0, 1, 1], [], []>} : vector<8x8xf32>, vector<8x320xf32>, vector<8x320xf32> -> vector<8x320xf32>
    %9 = arith.addf %0, %8 : vector<8x320xf32>
    %c0_8 = arith.constant 0 : index
    %c0_9 = arith.constant 0 : index
    %c0_10 = arith.constant 0 : index
    %c24 = arith.constant 24 : index
    %10 = vector.load %arg3[%c0_8, %c0_9, %c0_10, %c24] : memref<1x1x8x448xf32, #tpu.memory_space<vmem>>, vector<1x1x8x320xf32>
    %11 = vector.shape_cast %10 : vector<1x1x8x320xf32> to vector<8x320xf32>
    %c1 = arith.constant 1 : index
    %c0_11 = arith.constant 0 : index
    %12 = vector.load %arg5[%c1, %c0_11] : memref<9x320xf32, #tpu.memory_space<vmem>>, vector<1x320xf32>
    %13 = vector.broadcast %12 : vector<1x320xf32> to vector<8x320xf32>
    %14 = arith.mulf %11, %13 : vector<8x320xf32>
    %c1_12 = arith.constant 1 : index
    %c0_13 = arith.constant 0 : index
    %c0_14 = arith.constant 0 : index
    %15 = vector.load %arg4[%c1_12, %c0_13, %c0_14] : memref<27x8x8xf32, #tpu.memory_space<vmem>>, vector<1x8x8xf32>
    %16 = vector.shape_cast %15 : vector<1x8x8xf32> to vector<8x8xf32>
    %cst_15 = arith.constant dense<0.000000e+00> : vector<8x320xf32>
    %17 = tpu.matmul %16, %14, %cst_15 {dimension_numbers = #tpu.dot_dimension_numbers<[1], [0], [0], [1], [0, 0, 1, 1], [], []>} : vector<8x8xf32>, vector<8x320xf32>, vector<8x320xf32> -> vector<8x320xf32>
    %18 = arith.addf %9, %17 : vector<8x320xf32>
    %c0_16 = arith.constant 0 : index
    %c0_17 = arith.constant 0 : index
    %c0_18 = arith.constant 0 : index
    %c25 = arith.constant 25 : index
    %19 = vector.load %arg3[%c0_16, %c0_17, %c0_18, %c25] : memref<1x1x8x448xf32, #tpu.memory_space<vmem>>, vector<1x1x8x320xf32>
    %20 = vector.shape_cast %19 : vector<1x1x8x320xf32> to vector<8x320xf32>
    %c2 = arith.constant 2 : index
    %c0_19 = arith.constant 0 : index
    %21 = vector.load %arg5[%c2, %c0_19] : memref<9x320xf32, #tpu.memory_space<vmem>>, vector<1x320xf32>
    %22 = vector.broadcast %21 : vector<1x320xf32> to vector<8x320xf32>
    %23 = arith.mulf %20, %22 : vector<8x320xf32>
    %c2_20 = arith.constant 2 : index
    %c0_21 = arith.constant 0 : index
    %c0_22 = arith.constant 0 : index
    %24 = vector.load %arg4[%c2_20, %c0_21, %c0_22] : memref<27x8x8xf32, #tpu.memory_space<vmem>>, vector<1x8x8xf32>
    %25 = vector.shape_cast %24 : vector<1x8x8xf32> to vector<8x8xf32>
    %cst_23 = arith.constant dense<0.000000e+00> : vector<8x320xf32>
    %26 = tpu.matmul %25, %23, %cst_23 {dimension_numbers = #tpu.dot_dimension_numbers<[1], [0], [0], [1], [0, 0, 1, 1], [], []>} : vector<8x8xf32>, vector<8x320xf32>, vector<8x320xf32> -> vector<8x320xf32>
    %27 = arith.addf %18, %26 : vector<8x320xf32>
    %c0_24 = arith.constant 0 : index
    %c0_25 = arith.constant 0 : index
    %c0_26 = arith.constant 0 : index
    %c31 = arith.constant 31 : index
    %28 = vector.load %arg3[%c0_24, %c0_25, %c0_26, %c31] : memref<1x1x8x448xf32, #tpu.memory_space<vmem>>, vector<1x1x8x320xf32>
    %29 = vector.shape_cast %28 : vector<1x1x8x320xf32> to vector<8x320xf32>
    %c3 = arith.constant 3 : index
    %c0_27 = arith.constant 0 : index
    %30 = vector.load %arg5[%c3, %c0_27] : memref<9x320xf32, #tpu.memory_space<vmem>>, vector<1x320xf32>
    %31 = vector.broadcast %30 : vector<1x320xf32> to vector<8x320xf32>
    %32 = arith.mulf %29, %31 : vector<8x320xf32>
    %c3_28 = arith.constant 3 : index
    %c0_29 = arith.constant 0 : index
    %c0_30 = arith.constant 0 : index
    %33 = vector.load %arg4[%c3_28, %c0_29, %c0_30] : memref<27x8x8xf32, #tpu.memory_space<vmem>>, vector<1x8x8xf32>
    %34 = vector.shape_cast %33 : vector<1x8x8xf32> to vector<8x8xf32>
    %cst_31 = arith.constant dense<0.000000e+00> : vector<8x320xf32>
    %35 = tpu.matmul %34, %32, %cst_31 {dimension_numbers = #tpu.dot_dimension_numbers<[1], [0], [0], [1], [0, 0, 1, 1], [], []>} : vector<8x8xf32>, vector<8x320xf32>, vector<8x320xf32> -> vector<8x320xf32>
    %36 = arith.addf %27, %35 : vector<8x320xf32>
    %c0_32 = arith.constant 0 : index
    %c0_33 = arith.constant 0 : index
    %c0_34 = arith.constant 0 : index
    %c32 = arith.constant 32 : index
    %37 = vector.load %arg3[%c0_32, %c0_33, %c0_34, %c32] : memref<1x1x8x448xf32, #tpu.memory_space<vmem>>, vector<1x1x8x320xf32>
    %38 = vector.shape_cast %37 : vector<1x1x8x320xf32> to vector<8x320xf32>
    %c4 = arith.constant 4 : index
    %c0_35 = arith.constant 0 : index
    %c0_36 = arith.constant 0 : index
    %39 = vector.load %arg4[%c4, %c0_35, %c0_36] : memref<27x8x8xf32, #tpu.memory_space<vmem>>, vector<1x8x8xf32>
    %40 = vector.shape_cast %39 : vector<1x8x8xf32> to vector<8x8xf32>
    %cst_37 = arith.constant dense<0.000000e+00> : vector<8x320xf32>
    %41 = tpu.matmul %40, %38, %cst_37 {dimension_numbers = #tpu.dot_dimension_numbers<[1], [0], [0], [1], [0, 0, 1, 1], [], []>} : vector<8x8xf32>, vector<8x320xf32>, vector<8x320xf32> -> vector<8x320xf32>
    %42 = arith.addf %36, %41 : vector<8x320xf32>
    %c0_38 = arith.constant 0 : index
    %c0_39 = arith.constant 0 : index
    %c0_40 = arith.constant 0 : index
    %c33 = arith.constant 33 : index
    %43 = vector.load %arg3[%c0_38, %c0_39, %c0_40, %c33] : memref<1x1x8x448xf32, #tpu.memory_space<vmem>>, vector<1x1x8x320xf32>
    %44 = vector.shape_cast %43 : vector<1x1x8x320xf32> to vector<8x320xf32>
    %c5 = arith.constant 5 : index
    %c0_41 = arith.constant 0 : index
    %45 = vector.load %arg5[%c5, %c0_41] : memref<9x320xf32, #tpu.memory_space<vmem>>, vector<1x320xf32>
    %46 = vector.broadcast %45 : vector<1x320xf32> to vector<8x320xf32>
    %47 = arith.mulf %44, %46 : vector<8x320xf32>
    %c5_42 = arith.constant 5 : index
    %c0_43 = arith.constant 0 : index
    %c0_44 = arith.constant 0 : index
    %48 = vector.load %arg4[%c5_42, %c0_43, %c0_44] : memref<27x8x8xf32, #tpu.memory_space<vmem>>, vector<1x8x8xf32>
    %49 = vector.shape_cast %48 : vector<1x8x8xf32> to vector<8x8xf32>
    %cst_45 = arith.constant dense<0.000000e+00> : vector<8x320xf32>
    %50 = tpu.matmul %49, %47, %cst_45 {dimension_numbers = #tpu.dot_dimension_numbers<[1], [0], [0], [1], [0, 0, 1, 1], [], []>} : vector<8x8xf32>, vector<8x320xf32>, vector<8x320xf32> -> vector<8x320xf32>
    %51 = arith.addf %42, %50 : vector<8x320xf32>
    %c0_46 = arith.constant 0 : index
    %c0_47 = arith.constant 0 : index
    %c0_48 = arith.constant 0 : index
    %c39 = arith.constant 39 : index
    %52 = vector.load %arg3[%c0_46, %c0_47, %c0_48, %c39] : memref<1x1x8x448xf32, #tpu.memory_space<vmem>>, vector<1x1x8x320xf32>
    %53 = vector.shape_cast %52 : vector<1x1x8x320xf32> to vector<8x320xf32>
    %c6 = arith.constant 6 : index
    %c0_49 = arith.constant 0 : index
    %54 = vector.load %arg5[%c6, %c0_49] : memref<9x320xf32, #tpu.memory_space<vmem>>, vector<1x320xf32>
    %55 = vector.broadcast %54 : vector<1x320xf32> to vector<8x320xf32>
    %56 = arith.mulf %53, %55 : vector<8x320xf32>
    %c6_50 = arith.constant 6 : index
    %c0_51 = arith.constant 0 : index
    %c0_52 = arith.constant 0 : index
    %57 = vector.load %arg4[%c6_50, %c0_51, %c0_52] : memref<27x8x8xf32, #tpu.memory_space<vmem>>, vector<1x8x8xf32>
    %58 = vector.shape_cast %57 : vector<1x8x8xf32> to vector<8x8xf32>
    %cst_53 = arith.constant dense<0.000000e+00> : vector<8x320xf32>
    %59 = tpu.matmul %58, %56, %cst_53 {dimension_numbers = #tpu.dot_dimension_numbers<[1], [0], [0], [1], [0, 0, 1, 1], [], []>} : vector<8x8xf32>, vector<8x320xf32>, vector<8x320xf32> -> vector<8x320xf32>
    %60 = arith.addf %51, %59 : vector<8x320xf32>
    %c0_54 = arith.constant 0 : index
    %c0_55 = arith.constant 0 : index
    %c0_56 = arith.constant 0 : index
    %c40 = arith.constant 40 : index
    %61 = vector.load %arg3[%c0_54, %c0_55, %c0_56, %c40] : memref<1x1x8x448xf32, #tpu.memory_space<vmem>>, vector<1x1x8x320xf32>
    %62 = vector.shape_cast %61 : vector<1x1x8x320xf32> to vector<8x320xf32>
    %c7 = arith.constant 7 : index
    %c0_57 = arith.constant 0 : index
    %63 = vector.load %arg5[%c7, %c0_57] : memref<9x320xf32, #tpu.memory_space<vmem>>, vector<1x320xf32>
    %64 = vector.broadcast %63 : vector<1x320xf32> to vector<8x320xf32>
    %65 = arith.mulf %62, %64 : vector<8x320xf32>
    %c7_58 = arith.constant 7 : index
    %c0_59 = arith.constant 0 : index
    %c0_60 = arith.constant 0 : index
    %66 = vector.load %arg4[%c7_58, %c0_59, %c0_60] : memref<27x8x8xf32, #tpu.memory_space<vmem>>, vector<1x8x8xf32>
    %67 = vector.shape_cast %66 : vector<1x8x8xf32> to vector<8x8xf32>
    %cst_61 = arith.constant dense<0.000000e+00> : vector<8x320xf32>
    %68 = tpu.matmul %67, %65, %cst_61 {dimension_numbers = #tpu.dot_dimension_numbers<[1], [0], [0], [1], [0, 0, 1, 1], [], []>} : vector<8x8xf32>, vector<8x320xf32>, vector<8x320xf32> -> vector<8x320xf32>
    %69 = arith.addf %60, %68 : vector<8x320xf32>
    %c0_62 = arith.constant 0 : index
    %c0_63 = arith.constant 0 : index
    %c0_64 = arith.constant 0 : index
    %c41 = arith.constant 41 : index
    %70 = vector.load %arg3[%c0_62, %c0_63, %c0_64, %c41] : memref<1x1x8x448xf32, #tpu.memory_space<vmem>>, vector<1x1x8x320xf32>
    %71 = vector.shape_cast %70 : vector<1x1x8x320xf32> to vector<8x320xf32>
    %c8 = arith.constant 8 : index
    %c0_65 = arith.constant 0 : index
    %72 = vector.load %arg5[%c8, %c0_65] : memref<9x320xf32, #tpu.memory_space<vmem>>, vector<1x320xf32>
    %73 = vector.broadcast %72 : vector<1x320xf32> to vector<8x320xf32>
    %74 = arith.mulf %71, %73 : vector<8x320xf32>
    %c8_66 = arith.constant 8 : index
    %c0_67 = arith.constant 0 : index
    %c0_68 = arith.constant 0 : index
    %75 = vector.load %arg4[%c8_66, %c0_67, %c0_68] : memref<27x8x8xf32, #tpu.memory_space<vmem>>, vector<1x8x8xf32>
    %76 = vector.shape_cast %75 : vector<1x8x8xf32> to vector<8x8xf32>
    %cst_69 = arith.constant dense<0.000000e+00> : vector<8x320xf32>
    %77 = tpu.matmul %76, %74, %cst_69 {dimension_numbers = #tpu.dot_dimension_numbers<[1], [0], [0], [1], [0, 0, 1, 1], [], []>} : vector<8x8xf32>, vector<8x320xf32>, vector<8x320xf32> -> vector<8x320xf32>
    %78 = arith.addf %69, %77 : vector<8x320xf32>
    %c0_70 = arith.constant 0 : index
    %c0_71 = arith.constant 0 : index
    %c0_72 = arith.constant 0 : index
    %c55 = arith.constant 55 : index
    %79 = vector.load %arg3[%c0_70, %c0_71, %c0_72, %c55] : memref<1x1x8x448xf32, #tpu.memory_space<vmem>>, vector<1x1x8x320xf32>
    %80 = vector.shape_cast %79 : vector<1x1x8x320xf32> to vector<8x320xf32>
    %c0_73 = arith.constant 0 : index
    %c0_74 = arith.constant 0 : index
    %81 = vector.load %arg5[%c0_73, %c0_74] : memref<9x320xf32, #tpu.memory_space<vmem>>, vector<1x320xf32>
    %82 = vector.broadcast %81 : vector<1x320xf32> to vector<8x320xf32>
    %83 = arith.mulf %80, %82 : vector<8x320xf32>
    %c9 = arith.constant 9 : index
    %c0_75 = arith.constant 0 : index
    %c0_76 = arith.constant 0 : index
    %84 = vector.load %arg4[%c9, %c0_75, %c0_76] : memref<27x8x8xf32, #tpu.memory_space<vmem>>, vector<1x8x8xf32>
    %85 = vector.shape_cast %84 : vector<1x8x8xf32> to vector<8x8xf32>
    %cst_77 = arith.constant dense<0.000000e+00> : vector<8x320xf32>
    %86 = tpu.matmul %85, %83, %cst_77 {dimension_numbers = #tpu.dot_dimension_numbers<[1], [0], [0], [1], [0, 0, 1, 1], [], []>} : vector<8x8xf32>, vector<8x320xf32>, vector<8x320xf32> -> vector<8x320xf32>
    %87 = arith.addf %78, %86 : vector<8x320xf32>
    %c0_78 = arith.constant 0 : index
    %c0_79 = arith.constant 0 : index
    %c0_80 = arith.constant 0 : index
    %c56 = arith.constant 56 : index
    %88 = vector.load %arg3[%c0_78, %c0_79, %c0_80, %c56] : memref<1x1x8x448xf32, #tpu.memory_space<vmem>>, vector<1x1x8x320xf32>
    %89 = vector.shape_cast %88 : vector<1x1x8x320xf32> to vector<8x320xf32>
    %c1_81 = arith.constant 1 : index
    %c0_82 = arith.constant 0 : index
    %90 = vector.load %arg5[%c1_81, %c0_82] : memref<9x320xf32, #tpu.memory_space<vmem>>, vector<1x320xf32>
    %91 = vector.broadcast %90 : vector<1x320xf32> to vector<8x320xf32>
    %92 = arith.mulf %89, %91 : vector<8x320xf32>
    %c10 = arith.constant 10 : index
    %c0_83 = arith.constant 0 : index
    %c0_84 = arith.constant 0 : index
    %93 = vector.load %arg4[%c10, %c0_83, %c0_84] : memref<27x8x8xf32, #tpu.memory_space<vmem>>, vector<1x8x8xf32>
    %94 = vector.shape_cast %93 : vector<1x8x8xf32> to vector<8x8xf32>
    %cst_85 = arith.constant dense<0.000000e+00> : vector<8x320xf32>
    %95 = tpu.matmul %94, %92, %cst_85 {dimension_numbers = #tpu.dot_dimension_numbers<[1], [0], [0], [1], [0, 0, 1, 1], [], []>} : vector<8x8xf32>, vector<8x320xf32>, vector<8x320xf32> -> vector<8x320xf32>
    %96 = arith.addf %87, %95 : vector<8x320xf32>
    %c0_86 = arith.constant 0 : index
    %c0_87 = arith.constant 0 : index
    %c0_88 = arith.constant 0 : index
    %c57 = arith.constant 57 : index
    %97 = vector.load %arg3[%c0_86, %c0_87, %c0_88, %c57] : memref<1x1x8x448xf32, #tpu.memory_space<vmem>>, vector<1x1x8x320xf32>
    %98 = vector.shape_cast %97 : vector<1x1x8x320xf32> to vector<8x320xf32>
    %c2_89 = arith.constant 2 : index
    %c0_90 = arith.constant 0 : index
    %99 = vector.load %arg5[%c2_89, %c0_90] : memref<9x320xf32, #tpu.memory_space<vmem>>, vector<1x320xf32>
    %100 = vector.broadcast %99 : vector<1x320xf32> to vector<8x320xf32>
    %101 = arith.mulf %98, %100 : vector<8x320xf32>
    %c11 = arith.constant 11 : index
    %c0_91 = arith.constant 0 : index
    %c0_92 = arith.constant 0 : index
    %102 = vector.load %arg4[%c11, %c0_91, %c0_92] : memref<27x8x8xf32, #tpu.memory_space<vmem>>, vector<1x8x8xf32>
    %103 = vector.shape_cast %102 : vector<1x8x8xf32> to vector<8x8xf32>
    %cst_93 = arith.constant dense<0.000000e+00> : vector<8x320xf32>
    %104 = tpu.matmul %103, %101, %cst_93 {dimension_numbers = #tpu.dot_dimension_numbers<[1], [0], [0], [1], [0, 0, 1, 1], [], []>} : vector<8x8xf32>, vector<8x320xf32>, vector<8x320xf32> -> vector<8x320xf32>
    %105 = arith.addf %96, %104 : vector<8x320xf32>
    %c0_94 = arith.constant 0 : index
    %c0_95 = arith.constant 0 : index
    %c0_96 = arith.constant 0 : index
    %c63 = arith.constant 63 : index
    %106 = vector.load %arg3[%c0_94, %c0_95, %c0_96, %c63] : memref<1x1x8x448xf32, #tpu.memory_space<vmem>>, vector<1x1x8x320xf32>
    %107 = vector.shape_cast %106 : vector<1x1x8x320xf32> to vector<8x320xf32>
    %c3_97 = arith.constant 3 : index
    %c0_98 = arith.constant 0 : index
    %108 = vector.load %arg5[%c3_97, %c0_98] : memref<9x320xf32, #tpu.memory_space<vmem>>, vector<1x320xf32>
    %109 = vector.broadcast %108 : vector<1x320xf32> to vector<8x320xf32>
    %110 = arith.mulf %107, %109 : vector<8x320xf32>
    %c12 = arith.constant 12 : index
    %c0_99 = arith.constant 0 : index
    %c0_100 = arith.constant 0 : index
    %111 = vector.load %arg4[%c12, %c0_99, %c0_100] : memref<27x8x8xf32, #tpu.memory_space<vmem>>, vector<1x8x8xf32>
    %112 = vector.shape_cast %111 : vector<1x8x8xf32> to vector<8x8xf32>
    %cst_101 = arith.constant dense<0.000000e+00> : vector<8x320xf32>
    %113 = tpu.matmul %112, %110, %cst_101 {dimension_numbers = #tpu.dot_dimension_numbers<[1], [0], [0], [1], [0, 0, 1, 1], [], []>} : vector<8x8xf32>, vector<8x320xf32>, vector<8x320xf32> -> vector<8x320xf32>
    %114 = arith.addf %105, %113 : vector<8x320xf32>
    %c0_102 = arith.constant 0 : index
    %c0_103 = arith.constant 0 : index
    %c0_104 = arith.constant 0 : index
    %c64 = arith.constant 64 : index
    %115 = vector.load %arg3[%c0_102, %c0_103, %c0_104, %c64] : memref<1x1x8x448xf32, #tpu.memory_space<vmem>>, vector<1x1x8x320xf32>
    %116 = vector.shape_cast %115 : vector<1x1x8x320xf32> to vector<8x320xf32>
    %c13 = arith.constant 13 : index
    %c0_105 = arith.constant 0 : index
    %c0_106 = arith.constant 0 : index
    %117 = vector.load %arg4[%c13, %c0_105, %c0_106] : memref<27x8x8xf32, #tpu.memory_space<vmem>>, vector<1x8x8xf32>
    %118 = vector.shape_cast %117 : vector<1x8x8xf32> to vector<8x8xf32>
    %cst_107 = arith.constant dense<0.000000e+00> : vector<8x320xf32>
    %119 = tpu.matmul %118, %116, %cst_107 {dimension_numbers = #tpu.dot_dimension_numbers<[1], [0], [0], [1], [0, 0, 1, 1], [], []>} : vector<8x8xf32>, vector<8x320xf32>, vector<8x320xf32> -> vector<8x320xf32>
    %120 = arith.addf %114, %119 : vector<8x320xf32>
    %c0_108 = arith.constant 0 : index
    %c0_109 = arith.constant 0 : index
    %c0_110 = arith.constant 0 : index
    %c65 = arith.constant 65 : index
    %121 = vector.load %arg3[%c0_108, %c0_109, %c0_110, %c65] : memref<1x1x8x448xf32, #tpu.memory_space<vmem>>, vector<1x1x8x320xf32>
    %122 = vector.shape_cast %121 : vector<1x1x8x320xf32> to vector<8x320xf32>
    %c5_111 = arith.constant 5 : index
    %c0_112 = arith.constant 0 : index
    %123 = vector.load %arg5[%c5_111, %c0_112] : memref<9x320xf32, #tpu.memory_space<vmem>>, vector<1x320xf32>
    %124 = vector.broadcast %123 : vector<1x320xf32> to vector<8x320xf32>
    %125 = arith.mulf %122, %124 : vector<8x320xf32>
    %c14 = arith.constant 14 : index
    %c0_113 = arith.constant 0 : index
    %c0_114 = arith.constant 0 : index
    %126 = vector.load %arg4[%c14, %c0_113, %c0_114] : memref<27x8x8xf32, #tpu.memory_space<vmem>>, vector<1x8x8xf32>
    %127 = vector.shape_cast %126 : vector<1x8x8xf32> to vector<8x8xf32>
    %cst_115 = arith.constant dense<0.000000e+00> : vector<8x320xf32>
    %128 = tpu.matmul %127, %125, %cst_115 {dimension_numbers = #tpu.dot_dimension_numbers<[1], [0], [0], [1], [0, 0, 1, 1], [], []>} : vector<8x8xf32>, vector<8x320xf32>, vector<8x320xf32> -> vector<8x320xf32>
    %129 = arith.addf %120, %128 : vector<8x320xf32>
    %c0_116 = arith.constant 0 : index
    %c0_117 = arith.constant 0 : index
    %c0_118 = arith.constant 0 : index
    %c71 = arith.constant 71 : index
    %130 = vector.load %arg3[%c0_116, %c0_117, %c0_118, %c71] : memref<1x1x8x448xf32, #tpu.memory_space<vmem>>, vector<1x1x8x320xf32>
    %131 = vector.shape_cast %130 : vector<1x1x8x320xf32> to vector<8x320xf32>
    %c6_119 = arith.constant 6 : index
    %c0_120 = arith.constant 0 : index
    %132 = vector.load %arg5[%c6_119, %c0_120] : memref<9x320xf32, #tpu.memory_space<vmem>>, vector<1x320xf32>
    %133 = vector.broadcast %132 : vector<1x320xf32> to vector<8x320xf32>
    %134 = arith.mulf %131, %133 : vector<8x320xf32>
    %c15 = arith.constant 15 : index
    %c0_121 = arith.constant 0 : index
    %c0_122 = arith.constant 0 : index
    %135 = vector.load %arg4[%c15, %c0_121, %c0_122] : memref<27x8x8xf32, #tpu.memory_space<vmem>>, vector<1x8x8xf32>
    %136 = vector.shape_cast %135 : vector<1x8x8xf32> to vector<8x8xf32>
    %cst_123 = arith.constant dense<0.000000e+00> : vector<8x320xf32>
    %137 = tpu.matmul %136, %134, %cst_123 {dimension_numbers = #tpu.dot_dimension_numbers<[1], [0], [0], [1], [0, 0, 1, 1], [], []>} : vector<8x8xf32>, vector<8x320xf32>, vector<8x320xf32> -> vector<8x320xf32>
    %138 = arith.addf %129, %137 : vector<8x320xf32>
    %c0_124 = arith.constant 0 : index
    %c0_125 = arith.constant 0 : index
    %c0_126 = arith.constant 0 : index
    %c72 = arith.constant 72 : index
    %139 = vector.load %arg3[%c0_124, %c0_125, %c0_126, %c72] : memref<1x1x8x448xf32, #tpu.memory_space<vmem>>, vector<1x1x8x320xf32>
    %140 = vector.shape_cast %139 : vector<1x1x8x320xf32> to vector<8x320xf32>
    %c7_127 = arith.constant 7 : index
    %c0_128 = arith.constant 0 : index
    %141 = vector.load %arg5[%c7_127, %c0_128] : memref<9x320xf32, #tpu.memory_space<vmem>>, vector<1x320xf32>
    %142 = vector.broadcast %141 : vector<1x320xf32> to vector<8x320xf32>
    %143 = arith.mulf %140, %142 : vector<8x320xf32>
    %c16 = arith.constant 16 : index
    %c0_129 = arith.constant 0 : index
    %c0_130 = arith.constant 0 : index
    %144 = vector.load %arg4[%c16, %c0_129, %c0_130] : memref<27x8x8xf32, #tpu.memory_space<vmem>>, vector<1x8x8xf32>
    %145 = vector.shape_cast %144 : vector<1x8x8xf32> to vector<8x8xf32>
    %cst_131 = arith.constant dense<0.000000e+00> : vector<8x320xf32>
    %146 = tpu.matmul %145, %143, %cst_131 {dimension_numbers = #tpu.dot_dimension_numbers<[1], [0], [0], [1], [0, 0, 1, 1], [], []>} : vector<8x8xf32>, vector<8x320xf32>, vector<8x320xf32> -> vector<8x320xf32>
    %147 = arith.addf %138, %146 : vector<8x320xf32>
    %c0_132 = arith.constant 0 : index
    %c0_133 = arith.constant 0 : index
    %c0_134 = arith.constant 0 : index
    %c73 = arith.constant 73 : index
    %148 = vector.load %arg3[%c0_132, %c0_133, %c0_134, %c73] : memref<1x1x8x448xf32, #tpu.memory_space<vmem>>, vector<1x1x8x320xf32>
    %149 = vector.shape_cast %148 : vector<1x1x8x320xf32> to vector<8x320xf32>
    %c8_135 = arith.constant 8 : index
    %c0_136 = arith.constant 0 : index
    %150 = vector.load %arg5[%c8_135, %c0_136] : memref<9x320xf32, #tpu.memory_space<vmem>>, vector<1x320xf32>
    %151 = vector.broadcast %150 : vector<1x320xf32> to vector<8x320xf32>
    %152 = arith.mulf %149, %151 : vector<8x320xf32>
    %c17 = arith.constant 17 : index
    %c0_137 = arith.constant 0 : index
    %c0_138 = arith.constant 0 : index
    %153 = vector.load %arg4[%c17, %c0_137, %c0_138] : memref<27x8x8xf32, #tpu.memory_space<vmem>>, vector<1x8x8xf32>
    %154 = vector.shape_cast %153 : vector<1x8x8xf32> to vector<8x8xf32>
    %cst_139 = arith.constant dense<0.000000e+00> : vector<8x320xf32>
    %155 = tpu.matmul %154, %152, %cst_139 {dimension_numbers = #tpu.dot_dimension_numbers<[1], [0], [0], [1], [0, 0, 1, 1], [], []>} : vector<8x8xf32>, vector<8x320xf32>, vector<8x320xf32> -> vector<8x320xf32>
    %156 = arith.addf %147, %155 : vector<8x320xf32>
    %c0_140 = arith.constant 0 : index
    %c0_141 = arith.constant 0 : index
    %c0_142 = arith.constant 0 : index
    %c87 = arith.constant 87 : index
    %157 = vector.load %arg3[%c0_140, %c0_141, %c0_142, %c87] : memref<1x1x8x448xf32, #tpu.memory_space<vmem>>, vector<1x1x8x320xf32>
    %158 = vector.shape_cast %157 : vector<1x1x8x320xf32> to vector<8x320xf32>
    %c0_143 = arith.constant 0 : index
    %c0_144 = arith.constant 0 : index
    %159 = vector.load %arg5[%c0_143, %c0_144] : memref<9x320xf32, #tpu.memory_space<vmem>>, vector<1x320xf32>
    %160 = vector.broadcast %159 : vector<1x320xf32> to vector<8x320xf32>
    %161 = arith.mulf %158, %160 : vector<8x320xf32>
    %c18 = arith.constant 18 : index
    %c0_145 = arith.constant 0 : index
    %c0_146 = arith.constant 0 : index
    %162 = vector.load %arg4[%c18, %c0_145, %c0_146] : memref<27x8x8xf32, #tpu.memory_space<vmem>>, vector<1x8x8xf32>
    %163 = vector.shape_cast %162 : vector<1x8x8xf32> to vector<8x8xf32>
    %cst_147 = arith.constant dense<0.000000e+00> : vector<8x320xf32>
    %164 = tpu.matmul %163, %161, %cst_147 {dimension_numbers = #tpu.dot_dimension_numbers<[1], [0], [0], [1], [0, 0, 1, 1], [], []>} : vector<8x8xf32>, vector<8x320xf32>, vector<8x320xf32> -> vector<8x320xf32>
    %165 = arith.addf %156, %164 : vector<8x320xf32>
    %c0_148 = arith.constant 0 : index
    %c0_149 = arith.constant 0 : index
    %c0_150 = arith.constant 0 : index
    %c88 = arith.constant 88 : index
    %166 = vector.load %arg3[%c0_148, %c0_149, %c0_150, %c88] : memref<1x1x8x448xf32, #tpu.memory_space<vmem>>, vector<1x1x8x320xf32>
    %167 = vector.shape_cast %166 : vector<1x1x8x320xf32> to vector<8x320xf32>
    %c1_151 = arith.constant 1 : index
    %c0_152 = arith.constant 0 : index
    %168 = vector.load %arg5[%c1_151, %c0_152] : memref<9x320xf32, #tpu.memory_space<vmem>>, vector<1x320xf32>
    %169 = vector.broadcast %168 : vector<1x320xf32> to vector<8x320xf32>
    %170 = arith.mulf %167, %169 : vector<8x320xf32>
    %c19 = arith.constant 19 : index
    %c0_153 = arith.constant 0 : index
    %c0_154 = arith.constant 0 : index
    %171 = vector.load %arg4[%c19, %c0_153, %c0_154] : memref<27x8x8xf32, #tpu.memory_space<vmem>>, vector<1x8x8xf32>
    %172 = vector.shape_cast %171 : vector<1x8x8xf32> to vector<8x8xf32>
    %cst_155 = arith.constant dense<0.000000e+00> : vector<8x320xf32>
    %173 = tpu.matmul %172, %170, %cst_155 {dimension_numbers = #tpu.dot_dimension_numbers<[1], [0], [0], [1], [0, 0, 1, 1], [], []>} : vector<8x8xf32>, vector<8x320xf32>, vector<8x320xf32> -> vector<8x320xf32>
    %174 = arith.addf %165, %173 : vector<8x320xf32>
    %c0_156 = arith.constant 0 : index
    %c0_157 = arith.constant 0 : index
    %c0_158 = arith.constant 0 : index
    %c89 = arith.constant 89 : index
    %175 = vector.load %arg3[%c0_156, %c0_157, %c0_158, %c89] : memref<1x1x8x448xf32, #tpu.memory_space<vmem>>, vector<1x1x8x320xf32>
    %176 = vector.shape_cast %175 : vector<1x1x8x320xf32> to vector<8x320xf32>
    %c2_159 = arith.constant 2 : index
    %c0_160 = arith.constant 0 : index
    %177 = vector.load %arg5[%c2_159, %c0_160] : memref<9x320xf32, #tpu.memory_space<vmem>>, vector<1x320xf32>
    %178 = vector.broadcast %177 : vector<1x320xf32> to vector<8x320xf32>
    %179 = arith.mulf %176, %178 : vector<8x320xf32>
    %c20 = arith.constant 20 : index
    %c0_161 = arith.constant 0 : index
    %c0_162 = arith.constant 0 : index
    %180 = vector.load %arg4[%c20, %c0_161, %c0_162] : memref<27x8x8xf32, #tpu.memory_space<vmem>>, vector<1x8x8xf32>
    %181 = vector.shape_cast %180 : vector<1x8x8xf32> to vector<8x8xf32>
    %cst_163 = arith.constant dense<0.000000e+00> : vector<8x320xf32>
    %182 = tpu.matmul %181, %179, %cst_163 {dimension_numbers = #tpu.dot_dimension_numbers<[1], [0], [0], [1], [0, 0, 1, 1], [], []>} : vector<8x8xf32>, vector<8x320xf32>, vector<8x320xf32> -> vector<8x320xf32>
    %183 = arith.addf %174, %182 : vector<8x320xf32>
    %c0_164 = arith.constant 0 : index
    %c0_165 = arith.constant 0 : index
    %c0_166 = arith.constant 0 : index
    %c95 = arith.constant 95 : index
    %184 = vector.load %arg3[%c0_164, %c0_165, %c0_166, %c95] : memref<1x1x8x448xf32, #tpu.memory_space<vmem>>, vector<1x1x8x320xf32>
    %185 = vector.shape_cast %184 : vector<1x1x8x320xf32> to vector<8x320xf32>
    %c3_167 = arith.constant 3 : index
    %c0_168 = arith.constant 0 : index
    %186 = vector.load %arg5[%c3_167, %c0_168] : memref<9x320xf32, #tpu.memory_space<vmem>>, vector<1x320xf32>
    %187 = vector.broadcast %186 : vector<1x320xf32> to vector<8x320xf32>
    %188 = arith.mulf %185, %187 : vector<8x320xf32>
    %c21 = arith.constant 21 : index
    %c0_169 = arith.constant 0 : index
    %c0_170 = arith.constant 0 : index
    %189 = vector.load %arg4[%c21, %c0_169, %c0_170] : memref<27x8x8xf32, #tpu.memory_space<vmem>>, vector<1x8x8xf32>
    %190 = vector.shape_cast %189 : vector<1x8x8xf32> to vector<8x8xf32>
    %cst_171 = arith.constant dense<0.000000e+00> : vector<8x320xf32>
    %191 = tpu.matmul %190, %188, %cst_171 {dimension_numbers = #tpu.dot_dimension_numbers<[1], [0], [0], [1], [0, 0, 1, 1], [], []>} : vector<8x8xf32>, vector<8x320xf32>, vector<8x320xf32> -> vector<8x320xf32>
    %192 = arith.addf %183, %191 : vector<8x320xf32>
    %c0_172 = arith.constant 0 : index
    %c0_173 = arith.constant 0 : index
    %c0_174 = arith.constant 0 : index
    %c96 = arith.constant 96 : index
    %193 = vector.load %arg3[%c0_172, %c0_173, %c0_174, %c96] : memref<1x1x8x448xf32, #tpu.memory_space<vmem>>, vector<1x1x8x320xf32>
    %194 = vector.shape_cast %193 : vector<1x1x8x320xf32> to vector<8x320xf32>
    %c22 = arith.constant 22 : index
    %c0_175 = arith.constant 0 : index
    %c0_176 = arith.constant 0 : index
    %195 = vector.load %arg4[%c22, %c0_175, %c0_176] : memref<27x8x8xf32, #tpu.memory_space<vmem>>, vector<1x8x8xf32>
    %196 = vector.shape_cast %195 : vector<1x8x8xf32> to vector<8x8xf32>
    %cst_177 = arith.constant dense<0.000000e+00> : vector<8x320xf32>
    %197 = tpu.matmul %196, %194, %cst_177 {dimension_numbers = #tpu.dot_dimension_numbers<[1], [0], [0], [1], [0, 0, 1, 1], [], []>} : vector<8x8xf32>, vector<8x320xf32>, vector<8x320xf32> -> vector<8x320xf32>
    %198 = arith.addf %192, %197 : vector<8x320xf32>
    %c0_178 = arith.constant 0 : index
    %c0_179 = arith.constant 0 : index
    %c0_180 = arith.constant 0 : index
    %c97 = arith.constant 97 : index
    %199 = vector.load %arg3[%c0_178, %c0_179, %c0_180, %c97] : memref<1x1x8x448xf32, #tpu.memory_space<vmem>>, vector<1x1x8x320xf32>
    %200 = vector.shape_cast %199 : vector<1x1x8x320xf32> to vector<8x320xf32>
    %c5_181 = arith.constant 5 : index
    %c0_182 = arith.constant 0 : index
    %201 = vector.load %arg5[%c5_181, %c0_182] : memref<9x320xf32, #tpu.memory_space<vmem>>, vector<1x320xf32>
    %202 = vector.broadcast %201 : vector<1x320xf32> to vector<8x320xf32>
    %203 = arith.mulf %200, %202 : vector<8x320xf32>
    %c23_183 = arith.constant 23 : index
    %c0_184 = arith.constant 0 : index
    %c0_185 = arith.constant 0 : index
    %204 = vector.load %arg4[%c23_183, %c0_184, %c0_185] : memref<27x8x8xf32, #tpu.memory_space<vmem>>, vector<1x8x8xf32>
    %205 = vector.shape_cast %204 : vector<1x8x8xf32> to vector<8x8xf32>
    %cst_186 = arith.constant dense<0.000000e+00> : vector<8x320xf32>
    %206 = tpu.matmul %205, %203, %cst_186 {dimension_numbers = #tpu.dot_dimension_numbers<[1], [0], [0], [1], [0, 0, 1, 1], [], []>} : vector<8x8xf32>, vector<8x320xf32>, vector<8x320xf32> -> vector<8x320xf32>
    %207 = arith.addf %198, %206 : vector<8x320xf32>
    %c0_187 = arith.constant 0 : index
    %c0_188 = arith.constant 0 : index
    %c0_189 = arith.constant 0 : index
    %c103 = arith.constant 103 : index
    %208 = vector.load %arg3[%c0_187, %c0_188, %c0_189, %c103] : memref<1x1x8x448xf32, #tpu.memory_space<vmem>>, vector<1x1x8x320xf32>
    %209 = vector.shape_cast %208 : vector<1x1x8x320xf32> to vector<8x320xf32>
    %c6_190 = arith.constant 6 : index
    %c0_191 = arith.constant 0 : index
    %210 = vector.load %arg5[%c6_190, %c0_191] : memref<9x320xf32, #tpu.memory_space<vmem>>, vector<1x320xf32>
    %211 = vector.broadcast %210 : vector<1x320xf32> to vector<8x320xf32>
    %212 = arith.mulf %209, %211 : vector<8x320xf32>
    %c24_192 = arith.constant 24 : index
    %c0_193 = arith.constant 0 : index
    %c0_194 = arith.constant 0 : index
    %213 = vector.load %arg4[%c24_192, %c0_193, %c0_194] : memref<27x8x8xf32, #tpu.memory_space<vmem>>, vector<1x8x8xf32>
    %214 = vector.shape_cast %213 : vector<1x8x8xf32> to vector<8x8xf32>
    %cst_195 = arith.constant dense<0.000000e+00> : vector<8x320xf32>
    %215 = tpu.matmul %214, %212, %cst_195 {dimension_numbers = #tpu.dot_dimension_numbers<[1], [0], [0], [1], [0, 0, 1, 1], [], []>} : vector<8x8xf32>, vector<8x320xf32>, vector<8x320xf32> -> vector<8x320xf32>
    %216 = arith.addf %207, %215 : vector<8x320xf32>
    %c0_196 = arith.constant 0 : index
    %c0_197 = arith.constant 0 : index
    %c0_198 = arith.constant 0 : index
    %c104 = arith.constant 104 : index
    %217 = vector.load %arg3[%c0_196, %c0_197, %c0_198, %c104] : memref<1x1x8x448xf32, #tpu.memory_space<vmem>>, vector<1x1x8x320xf32>
    %218 = vector.shape_cast %217 : vector<1x1x8x320xf32> to vector<8x320xf32>
    %c7_199 = arith.constant 7 : index
    %c0_200 = arith.constant 0 : index
    %219 = vector.load %arg5[%c7_199, %c0_200] : memref<9x320xf32, #tpu.memory_space<vmem>>, vector<1x320xf32>
    %220 = vector.broadcast %219 : vector<1x320xf32> to vector<8x320xf32>
    %221 = arith.mulf %218, %220 : vector<8x320xf32>
    %c25_201 = arith.constant 25 : index
    %c0_202 = arith.constant 0 : index
    %c0_203 = arith.constant 0 : index
    %222 = vector.load %arg4[%c25_201, %c0_202, %c0_203] : memref<27x8x8xf32, #tpu.memory_space<vmem>>, vector<1x8x8xf32>
    %223 = vector.shape_cast %222 : vector<1x8x8xf32> to vector<8x8xf32>
    %cst_204 = arith.constant dense<0.000000e+00> : vector<8x320xf32>
    %224 = tpu.matmul %223, %221, %cst_204 {dimension_numbers = #tpu.dot_dimension_numbers<[1], [0], [0], [1], [0, 0, 1, 1], [], []>} : vector<8x8xf32>, vector<8x320xf32>, vector<8x320xf32> -> vector<8x320xf32>
    %225 = arith.addf %216, %224 : vector<8x320xf32>
    %c0_205 = arith.constant 0 : index
    %c0_206 = arith.constant 0 : index
    %c0_207 = arith.constant 0 : index
    %c105 = arith.constant 105 : index
    %226 = vector.load %arg3[%c0_205, %c0_206, %c0_207, %c105] : memref<1x1x8x448xf32, #tpu.memory_space<vmem>>, vector<1x1x8x320xf32>
    %227 = vector.shape_cast %226 : vector<1x1x8x320xf32> to vector<8x320xf32>
    %c8_208 = arith.constant 8 : index
    %c0_209 = arith.constant 0 : index
    %228 = vector.load %arg5[%c8_208, %c0_209] : memref<9x320xf32, #tpu.memory_space<vmem>>, vector<1x320xf32>
    %229 = vector.broadcast %228 : vector<1x320xf32> to vector<8x320xf32>
    %230 = arith.mulf %227, %229 : vector<8x320xf32>
    %c26 = arith.constant 26 : index
    %c0_210 = arith.constant 0 : index
    %c0_211 = arith.constant 0 : index
    %231 = vector.load %arg4[%c26, %c0_210, %c0_211] : memref<27x8x8xf32, #tpu.memory_space<vmem>>, vector<1x8x8xf32>
    %232 = vector.shape_cast %231 : vector<1x8x8xf32> to vector<8x8xf32>
    %cst_212 = arith.constant dense<0.000000e+00> : vector<8x320xf32>
    %233 = tpu.matmul %232, %230, %cst_212 {dimension_numbers = #tpu.dot_dimension_numbers<[1], [0], [0], [1], [0, 0, 1, 1], [], []>} : vector<8x8xf32>, vector<8x320xf32>, vector<8x320xf32> -> vector<8x320xf32>
    %234 = arith.addf %225, %233 : vector<8x320xf32>
    %c0_213 = arith.constant 0 : index
    %c0_214 = arith.constant 0 : index
    %235 = vector.load %arg6[%c0_213, %c0_214] : memref<8x1xf32, #tpu.memory_space<vmem>>, vector<8x1xf32>
    %236 = vector.broadcast %235 : vector<8x1xf32> to vector<8x320xf32>
    %237 = arith.addf %234, %236 : vector<8x320xf32>
    %238 = arith.index_cast %arg0 : i32 to index
    %239 = memref.load %arg2[%238] : memref<16xi32, #tpu.memory_space<smem>>
    %240 = tpu.iota {dimensions = array<i32: 1>} : vector<1x320xi32>
    %241 = vector.broadcast %239 : i32 to vector<1x320xi32>
    %242 = arith.cmpi slt, %240, %241 : vector<1x320xi32>
    %243 = arith.extui %242 : vector<1x320xi1> to vector<1x320xi32>
    %244 = arith.sitofp %243 : vector<1x320xi32> to vector<1x320xf32>
    %245 = arith.sitofp %239 : i32 to f32
    %cst_215 = arith.constant 1.000000e+00 : f32
    %246 = arith.divf %cst_215, %245 : f32
    %247 = vector.broadcast %244 : vector<1x320xf32> to vector<8x320xf32>
    %248 = arith.mulf %237, %247 : vector<8x320xf32>
    %cst_216 = arith.constant dense<0.000000e+00> : vector<8xf32>
    %249 = vector.multi_reduction <add>, %248, %cst_216 [1] : vector<8x320xf32> to vector<8xf32>
    %250 = vector.shape_cast %249 : vector<8xf32> to vector<8x1xf32>
    %251 = vector.broadcast %246 : f32 to vector<8x1xf32>
    %252 = arith.mulf %250, %251 : vector<8x1xf32>
    %253 = vector.broadcast %252 : vector<8x1xf32> to vector<8x320xf32>
    %254 = arith.subf %237, %253 : vector<8x320xf32>
    %255 = vector.broadcast %244 : vector<1x320xf32> to vector<8x320xf32>
    %256 = arith.mulf %254, %255 : vector<8x320xf32>
    %257 = arith.mulf %256, %256 : vector<8x320xf32>
    %cst_217 = arith.constant dense<0.000000e+00> : vector<8xf32>
    %258 = vector.multi_reduction <add>, %257, %cst_217 [1] : vector<8x320xf32> to vector<8xf32>
    %259 = vector.shape_cast %258 : vector<8xf32> to vector<8x1xf32>
    %260 = vector.broadcast %246 : f32 to vector<8x1xf32>
    %261 = arith.mulf %259, %260 : vector<8x1xf32>
    %262 = vector.broadcast %252 : vector<8x1xf32> to vector<8x320xf32>
    %263 = arith.subf %237, %262 : vector<8x320xf32>
    %cst_218 = arith.constant 9.99999974E-6 : f32
    %264 = vector.broadcast %cst_218 : f32 to vector<8x1xf32>
    %265 = arith.addf %261, %264 : vector<8x1xf32>
    %266 = math.rsqrt %265 : vector<8x1xf32>
    %267 = vector.broadcast %266 : vector<8x1xf32> to vector<8x320xf32>
    %268 = arith.mulf %263, %267 : vector<8x320xf32>
    %c0_219 = arith.constant 0 : index
    %c0_220 = arith.constant 0 : index
    %269 = memref.load %arg7[%c0_219, %c0_220] : memref<1x1xf32, #tpu.memory_space<smem>>
    %cst_221 = arith.constant 0.000000e+00 : f32
    %270 = vector.broadcast %cst_221 : f32 to vector<8x320xf32>
    %271 = arith.cmpf oge, %268, %270 : vector<8x320xf32>
    %272 = vector.broadcast %269 : f32 to vector<8x320xf32>
    %273 = arith.mulf %268, %272 : vector<8x320xf32>
    %274 = arith.select %271, %268, %273 : vector<8x320xi1>, vector<8x320xf32>
    %c0_i32 = arith.constant 0 : i32
    %275 = arith.cmpi eq, %arg0, %c0_i32 : i32
    %276 = arith.extui %275 : i1 to i32
    %c0_i32_222 = arith.constant 0 : i32
    %277 = arith.cmpi ne, %276, %c0_i32_222 : i32
    scf.if %277 {
      %281 = vector.extract_strided_slice %274 {offsets = [0, 0], sizes = [8, 128], strides = [1, 1]} : vector<8x320xf32> to vector<8x128xf32>
      %c0_225 = arith.constant 0 : index
      %c0_226 = arith.constant 0 : index
      %c0_227 = arith.constant 0 : index
      %c0_228 = arith.constant 0 : index
      %282 = vector.load %arg8[%c0_225, %c0_226, %c0_227, %c0_228] : memref<1x1x8x128xf32, #tpu.memory_space<vmem>>, vector<1x1x8x128xf32>
      %283 = vector.shape_cast %282 : vector<1x1x8x128xf32> to vector<8x128xf32>
      %284 = vector.shape_cast %281 : vector<8x128xf32> to vector<1x1x8x128xf32>
      tpu.vector_store %arg8[%c0_225, %c0_226, %c0_227, %c0_228], %284 {strides = array<i32>} : memref<1x1x8x128xf32, #tpu.memory_space<vmem>>, vector<1x1x8x128xf32>,
    } else {
    }
    %c0_i32_223 = arith.constant 0 : i32
    %278 = arith.cmpi sgt, %arg0, %c0_i32_223 : i32
    %279 = arith.extui %278 : i1 to i32
    %c0_i32_224 = arith.constant 0 : i32
    %280 = arith.cmpi ne, %279, %c0_i32_224 : i32
    scf.if %280 {
      %281 = vector.extract_strided_slice %274 {offsets = [0, 96], sizes = [8, 128], strides = [1, 1]} : vector<8x320xf32> to vector<8x128xf32>
      %c0_225 = arith.constant 0 : index
      %c0_226 = arith.constant 0 : index
      %c0_227 = arith.constant 0 : index
      %c0_228 = arith.constant 0 : index
      %282 = vector.load %arg8[%c0_225, %c0_226, %c0_227, %c0_228] : memref<1x1x8x128xf32, #tpu.memory_space<vmem>>, vector<1x1x8x128xf32>
      %283 = vector.shape_cast %282 : vector<1x1x8x128xf32> to vector<8x128xf32>
      %284 = vector.shape_cast %281 : vector<8x128xf32> to vector<1x1x8x128xf32>
      tpu.vector_store %arg8[%c0_225, %c0_226, %c0_227, %c0_228], %284 {strides = array<i32>} : memref<1x1x8x128xf32, #tpu.memory_space<vmem>>, vector<1x1x8x128xf32>,
    } else {
    }
    return
  }
  func.func @transform_0(%arg0: i32, %arg1: i32, %arg2: memref<16xi32, #tpu.memory_space<smem>>) -> (i32, i32, i32, i32) {
    %c0_i32 = arith.constant 0 : i32
    %c0_i32_0 = arith.constant 0 : i32
    %c0_i32_1 = arith.constant 0 : i32
    return %arg0, %arg1, %c0_i32, %c0_i32_0 : i32, i32, i32, i32
  }
  func.func @transform_1(%arg0: i32, %arg1: i32, %arg2: memref<16xi32, #tpu.memory_space<smem>>) -> (i32, i32, i32) {
    %c0_i32 = arith.constant 0 : i32
    %c0_i32_0 = arith.constant 0 : i32
    %c0_i32_1 = arith.constant 0 : i32
    %c0_i32_2 = arith.constant 0 : i32
    return %c0_i32, %c0_i32_0, %c0_i32_1 : i32, i32, i32
  }
  func.func @transform_2(%arg0: i32, %arg1: i32, %arg2: memref<16xi32, #tpu.memory_space<smem>>) -> (i32, i32) {
    %c0_i32 = arith.constant 0 : i32
    %c0_i32_0 = arith.constant 0 : i32
    %c0_i32_1 = arith.constant 0 : i32
    return %c0_i32, %c0_i32_0 : i32, i32
  }
  func.func @transform_3(%arg0: i32, %arg1: i32, %arg2: memref<16xi32, #tpu.memory_space<smem>>) -> (i32, i32) {
    %c0_i32 = arith.constant 0 : i32
    %c0_i32_0 = arith.constant 0 : i32
    %c0_i32_1 = arith.constant 0 : i32
    return %c0_i32, %c0_i32_0 : i32, i32
  }
  func.func @transform_4(%arg0: i32, %arg1: i32, %arg2: memref<16xi32, #tpu.memory_space<smem>>) -> (i32, i32) {
    %c0_i32 = arith.constant 0 : i32
    %c0_i32_0 = arith.constant 0 : i32
    %c0_i32_1 = arith.constant 0 : i32
    return %c0_i32, %c0_i32_0 : i32, i32
  }
  func.func @transform_5(%arg0: i32, %arg1: i32, %arg2: memref<16xi32, #tpu.memory_space<smem>>) -> (i32, i32, i32, i32) {
    %c0_i32 = arith.constant 0 : i32
    %c0_i32_0 = arith.constant 0 : i32
    %c0_i32_1 = arith.constant 0 : i32
    return %arg0, %arg1, %c0_i32, %c0_i32_0 : i32, i32, i32, i32
  }
}

</mosaic_0001>

<bundles_post_ra>
// kernel: split_convolution_v1.1
= control target key start
LH: loop header
LB: loop body
LE: loop exit
PB: predicated region body
PF: predicated region fallthrough
CT: control target
= control target key end

     0   :  { %s6970_s0 = inlined_call_operand.vmem [shape: s32[16], index: 0, kind: input, shape index: {}]   ;;  %s6971_s1 = inlined_call_operand.vmem [shape: f32[16,2,8,448], index: 1, kind: input, shape index: {}]   ;;  %s6972_s2 = inlined_call_operand.vmem [shape: f32[27,8,8], index: 2, kind: input, shape index: {}]   ;;  %s6973_s3 = inlined_call_operand.vmem [shape: f32[9,320], index: 3, kind: input, shape index: {}]   ;;  %s6974_s4 = inlined_call_operand.vmem [shape: f32[8,1], index: 4, kind: input, shape index: {}]   ;;  %s6975_s5 = inlined_call_operand.<no memory space> [shape: f32[1,1], index: 5, kind: input, shape index: {}]   ;;  %s6976_s6 = inlined_call_operand.vmem [shape: f32[16,2,8,128], index: 6, kind: output, shape index: {}]  }
   0x1   :  { %s11_s23 = sshll.u32 %s6970_s0, 4  ;;  %15 = sst [smem:[#allocation4]] %s6975_s5  ;;  %s12_s23 = int_to_ptr.vmem [resolvable:$true] %s11_s23 }
   0x2   :  { %s5769_s26 = scalar_lea.vmem %s12_s23, 16  ;;  %p5774_p1 = scmp.lt.s32.totalorder %s12_s23, %s12_s23 }
   0x3   :  { %p5770_p0 = scmp.ne.s32.totalorder %s12_s23, %s5769_s26  ;;  %p5775_p2 = scmp.lt.s32.totalorder %s5769_s26, %s5769_s26 }
   0x5   :  { %p5776_p3 = por %p5775_p2, %p5774_p1 }
   0x7   :  { %p5777_p4 = pnand %p5776_p3, %p5770_p0 }
   0x9   :  { %5780 = shalt.err (!%p5777_p4)  }
   0xa   :  { %s5823_s27 = smov [#allocation3]  }
   0xb   :  { %14 = dma.vmem_to_smem %s12_s23, 16, %s5823_s27, [#allocation2] }
   0xc   :  { %5801 = dma.done.wait [#allocation2], 16 }
   0xd   :  { %5802 = vsyncadd [#allocation2], 4294967280 }
   0xe   :  { %17 = sfence }
   0xf   :  { %s5896_s28 = smov 0   ;;  %s5898_s0 = smov 0  }
  0x10   :  { %s5900_s29 = smov 0   ;;  %s5902_s5 = smov 0  }
  0x11   :  { %s5904_s30 = smov 0  }
  0x12 LB: > { %s32_s7 = sadd.s32 1, %s5813_s29  ;;  %s35_s8 = sadd.s32 1, %s5817_s5  ;;  %s5821_s30 = sphi %s5904_s30, %s23_s30   ;;  %s5817_s5 = sphi %s5902_s5, %s7044_s5   ;;  %s5813_s29 = sphi %s5900_s29, %s7043_s29   ;;  %s5809_s0 = sphi %s5898_s0, %s7042_s0   ;;  %s5805_s28 = sphi %s5896_s28, %s7041_s28  }
  0x13   : > { %p33_p5 = scmp.ge.s32.totalorder %s32_s7, 2  ;;  %p5400_p6 = scmp.ge.s32.totalorder %s5821_s30, 1 }
  0x14   : > { %p215_p7 = scmp.lt.s32.totalorder %s5821_s30, 33 }
  0x15   : > { %s7046_s7 = smov (%p33_p5, %s32_s7), 0  ;;  %s7048_s8 = smov (!%p33_p5, %s35_s8), %s5817_s5 }
  0x16   : > { %p216_p8 = pnand %p5400_p6, %p215_p7  ;;  %p37_p9 = scmp.ge.s32.totalorder %s7048_s8, 16 }
  0x17   : > { %s6979_s13 = smov (!%p216_p8), 24   ;;  %p250_p10 = scmp.lt.s32.totalorder (!%p216_p8), %s5809_s0, 15 }
  0x18   : > { %s7050_s8 = smov (%p37_p9, %s7048_s8), 0  ;;  %219 = sbr.rel (%p216_p8) target bundleno = 1152 (0x480), region = 40 }
  0x19   : > { %p252_p11 = scmp.lt.s32.totalorder (!%p216_p8), %s5805_s28, 1  ;;  %s6977_s14 = smov (!%p216_p8), 23  }
  0x1a   : > { %s6981_s26 = smov (!%p216_p8), 25   ;;  %s6983_s27 = smov (!%p216_p8), 31  }
  0x1b   : > { %s6985_s16 = smov (!%p216_p8), 33   ;;  %s6987_s17 = smov (!%p216_p8), 39  }
  0x1c   : > { %s6989_s22 = smov (!%p216_p8), 40   ;;  %s6991_s23 = smov (!%p216_p8), 41  }
  0x1d   : > { %v272_v0 = vlaneseq  ;;  %v5406_v2 = vld [vmem:[%s6973_s3 + $0x1] ss:$8 sm:$0x7]  ;;  %v270_v6 = vld [vmem:[%s6973_s3] ss:$8 sm:$0x7] }
  0x1e   : > { %s5972_s15 = scalar_select %p250_p10, %s5809_s0, 15  ;;  %v5412_v13 = vld [vmem:[%s6973_s3 + $0x2] ss:$8 sm:$0x7]  ;;  %v5842_v37 = vmov 0.0   ;;  %vm5843_vm0 = vmmov 0  }
  0x1f   : > { %v273_v1 = vshrl.u32 %v272_v0, 7  ;;  %s7052_s28 = smov (!%p252_p11, %s5805_s28), 1  ;;  %v5416_v16 = vld [vmem:[%s6973_s3 + $0x3] ss:$8 sm:$0x7]  ;;  %s5832_s24 = smov 55   ;;  %5554 = vmatprep.subr.mxu1 %v5842_v37  ;;  %415 = vmatprep.mubr.f32.mxu0 %v5842_v37 }
  0x20   : > { %s5404_s18 = sshll.u32 %s5972_s15, 1  ;;  %v5423_v21 = vld [vmem:[%s6973_s3 + $0x5] ss:$8 sm:$0x7]  ;;  %s5833_s9 = smov 56   ;;  %5556 = vmatprep.mubr.msk.f32.mxu1 %vm5843_vm0, %v5842_v37  ;;  %vm6994_vm1 = vcmask 195584  }
  0x21   : > { %v5934_v3 = vsub.s32 2, %v273_v1  ;;  %v5936_v4 = vsub.s32 0, %v273_v1  ;;  %v5938_v5 = vsub.s32 1, %v273_v1  ;;  %s264_s19 = sadd.s32 %s5404_s18, %s7052_s28  ;;  %v5427_v24 = vld [vmem:[%s6973_s3 + $0x6] ss:$8 sm:$0x7] }
  0x22   : > { %s5405_s20 = sshll.u32 %s264_s19, 3  ;;  %v5431_v29 = vld [vmem:[%s6973_s3 + $0x7] ss:$8 sm:$0x7]  ;;  %s5834_s10 = smov 57   ;;  %vm6993_vm2 = vcmask 187392  }
  0x23   : > { %v5944_v7 = vrot.slane %v5406_v2, %v5934_v3  ;;  %v5947_v8 = vrot.slane %v5406_v2, %v5936_v4  ;;  %v5954_v9 = vrot.slane %v5406_v2, %v5938_v5  ;;  %v5957_v10 = vrot.slane %v270_v6, %v5936_v4  ;;  %s5998_s25 = scalar_lea.vmem %s6976_s6, %s5405_s20  ;;  %v5435_v32 = vld [vmem:[%s6973_s3 + $0x18] ss:$8 sm:$0x7]  ;;  %s5835_s11 = smov 63  }
  0x24   : > { %v5966_v11 = vrot.slane %v270_v6, %v5938_v5  ;;  %v5969_v12 = vrot.slane %v270_v6, %v5934_v3  ;;  %v5987_v14 = vrot.slane %v5412_v13, %v5936_v4  ;;  %v5990_v15 = vrot.slane %v5412_v13, %v5938_v5  ;;  %s5836_s12 = smov 65   ;;  %s5837_s18 = smov 71  }
  0x25   : > { %319 = vrot.lane.b32.xlu1 %v5944_v7, %s6979_s13  ;;  %315 = vrot.lane.b32.xlu0 %v5947_v8, %s6979_s13  ;;  %v6005_v17 = vrot.slane %v5412_v13, %v5934_v3  ;;  %v6008_v18 = vrot.slane %v5416_v16, %v5936_v4  ;;  %v6015_v19 = vrot.slane %v5416_v16, %v5938_v5  ;;  %s5838_s19 = smov 72   ;;  %s5839_s20 = smov 73   ;;  %vm6995_vm3 = vcmask 203776  }
  0x26   : > { %v6018_v20 = vrot.slane %v5416_v16, %v5934_v3  ;;  %v6028_v22 = vrot.slane %v5423_v21, %v5938_v5  ;;  %v6031_v23 = vrot.slane %v5423_v21, %v5936_v4  ;;  %v6041_v25 = vrot.slane %v5427_v24, %v5936_v4  ;;  %s5840_s21 = smov 87   ;;  %p5496_p12 = scmp.ne.s32.totalorder %s5809_s0, 0 }
  0x27   : > { %v6044_v26 = vrot.slane %v5423_v21, %v5934_v3  ;;  %v6051_v27 = vrot.slane %v5427_v24, %v5934_v3  ;;  %v6054_v28 = vrot.slane %v5427_v24, %v5938_v5  ;;  %v6062_v30 = vrot.slane %v5431_v29, %v5938_v5 }
  0x28   : > { %v6067_v31 = vrot.slane %v5431_v29, %v5936_v4  ;;  %v6075_v33 = vrot.slane %v5435_v32, %v5936_v4  ;;  %v6080_v34 = vrot.slane %v5431_v29, %v5934_v3  ;;  %v6085_v35 = vrot.slane %v5435_v32, %v5934_v3 }
  0x29   : > { %317 = vrot.lane.b32.xlu0 %v5954_v9, %s6979_s13  ;;  %284 = vrot.lane.b32.xlu1 %v5957_v10, %s6977_s14  ;;  %v6090_v36 = vrot.slane %v5435_v32, %v5938_v5  ;;  %s5402_s13 = sshll.u32 %s5972_s15, 3  ;;  %vm6996_vm4 = vcmask 252928   ;;  %s5847_s15 = smov 97   ;;  %vm6997_vm5 = vcmask 269312   ;;  %vm6998_vm6 = vcmask 318464  }
  0x2a   : > { %vm6999_vm7 = vcmask 326656   ;;  %vm7000_vm8 = vcmask 334848   ;;  %vm7001_vm9 = vcmask 449536   ;;  %vm7002_vm10 = vcmask 457728  }
  0x2b   : > { %vm2343_vm11 = vcmask 465920   ;;  %vm2522_vm12 = vcmask 515072   ;;  %vm2542_vm13 = vcmask 531456   ;;  %vm347_vm14 = vcmask 64512  }
  0x2c   : > { %vm2363_vm15 = vcmask 580608  }
  0x2d   : > { %286 = vrot.lane.b32.xlu0 %v5966_v11, %s6977_s14  ;;  %288 = vrot.lane.b32.xlu1 %v5969_v12, %s6977_s14  ;;  %s5401_s14 = sshll.u32 %s7052_s28, 2  ;;  %s5844_s28 = smov 104  }
  0x31   : > { %666 = vrot.lane.b32.xlu0 %v5987_v14, %s6981_s26  ;;  %668 = vrot.lane.b32.xlu1 %v5990_v15, %s6981_s26 }
  0x35   : > { %670 = vrot.lane.b32.xlu0 %v6005_v17, %s6981_s26  ;;  %860 = vrot.lane.b32.xlu1 %v6008_v18, %s6983_s27  ;;  %s256_s26 = sadd.s32 %s5402_s13, %s5401_s14  ;;  %s5845_s13 = smov 105  }
  0x36   : > { %s5846_s14 = smov 103  }
  0x39   : > { %862 = vrot.lane.b32.xlu0 %v6015_v19, %s6983_s27  ;;  %864 = vrot.lane.b32.xlu1 %v6018_v20, %s6983_s27  ;;  %s5403_s27 = sshll.u32 %s256_s26, 3  ;;  %s5848_s26 = smov 96  }
  0x3d   : > { %1220 = vrot.lane.b32.xlu1 %v6028_v22, %s6985_s16  ;;  %1218 = vrot.lane.b32.xlu0 %v6031_v23, %s6985_s16 }
  0x41   : > { %1412 = vrot.lane.b32.xlu1 %v6041_v25, %s6987_s17  ;;  %1222 = vrot.lane.b32.xlu0 %v6044_v26, %s6985_s16  ;;  %s5841_s16 = smov 88  }
  0x45   : > { %1416 = vrot.lane.b32.xlu1 %v6051_v27, %s6987_s17  ;;  %1414 = vrot.lane.b32.xlu0 %v6054_v28, %s6987_s17  ;;  %s5850_s17 = smov 95  }
  0x49   : > { %1608 = vrot.lane.b32.xlu1 %v6062_v30, %s6989_s22  ;;  %1606 = vrot.lane.b32.xlu0 %v6067_v31, %s6989_s22 }
  0x4d   : > { %1800 = vrot.lane.b32.xlu1 %v6075_v33, %s6991_s23  ;;  %1610 = vrot.lane.b32.xlu0 %v6080_v34, %s6989_s22 }
  0x51   : > { %1804 = vrot.lane.b32.xlu1 %v6085_v35, %s6991_s23  ;;  %1802 = vrot.lane.b32.xlu0 %v6090_v36, %s6991_s23  ;;  %s6158_s23 = scalar_lea.vmem %s6971_s1, %s5403_s27  ;;  %s5849_s27 = smov 89  }
  0x52   : > { %v6164_v38 = vld [vmem:[%s6158_s23] sm:$0xff]  ;;  %v6169_v42 = vld [vmem:[%s6158_s23 + $0x10] sm:$0xff]  ;;  %v6186_v61 = vld [vmem:[%s6158_s23 + $0x8] sm:$0xff] }
  0x55   : > { %1981 = vrot.lane.b32.xlu1 %v5966_v11, %s5832_s24  ;;  %1979 = vrot.lane.b32.xlu0 %v5957_v10, %s5832_s24 }
  0x59   : > { %2158 = vrot.lane.b32.xlu1 %v5947_v8, %s5833_s9  ;;  %1983 = vrot.lane.b32.xlu0 %v5969_v12, %s5832_s24 }
  0x5d   : > { %2162 = vrot.lane.b32.xlu1 %v5944_v7, %s5833_s9  ;;  %2160 = vrot.lane.b32.xlu0 %v5954_v9, %s5833_s9 }
  0x61   : > { %2339 = vrot.lane.b32.xlu1 %v5990_v15, %s5834_s10  ;;  %2337 = vrot.lane.b32.xlu0 %v5987_v14, %s5834_s10 }
  0x65   : > { %2516 = vrot.lane.b32.xlu1 %v6008_v18, %s5835_s11  ;;  %2341 = vrot.lane.b32.xlu0 %v6005_v17, %s5834_s10 }
  0x69   : > { %2520 = vrot.lane.b32.xlu1 %v6018_v20, %s5835_s11  ;;  %2518 = vrot.lane.b32.xlu0 %v6015_v19, %s5835_s11 }
  0x6d   : > { %2862 = vrot.lane.b32.xlu1 %v6028_v22, %s5836_s12  ;;  %2860 = vrot.lane.b32.xlu0 %v6031_v23, %s5836_s12 }
  0x71   : > { %3043 = vrot.lane.b32.xlu1 %v6041_v25, %s5837_s18  ;;  %2864 = vrot.lane.b32.xlu0 %v6044_v26, %s5836_s12 }
  0x75   : > { %3047 = vrot.lane.b32.xlu1 %v6051_v27, %s5837_s18  ;;  %3045 = vrot.lane.b32.xlu0 %v6054_v28, %s5837_s18 }
  0x79   : > { %3226 = vrot.lane.b32.xlu1 %v6067_v31, %s5838_s19  ;;  %3228 = vrot.lane.b32.xlu0 %v6062_v30, %s5838_s19 }
  0x7d   : > { %3230 = vrot.lane.b32.xlu1 %v6080_v34, %s5838_s19  ;;  %3411 = vrot.lane.b32.xlu0 %v6090_v36, %s5839_s20 }
  0x81   : > { %3409 = vrot.lane.b32.xlu1 %v6075_v33, %s5839_s20  ;;  %3594 = vrot.lane.b32.xlu0 %v5966_v11, %s5840_s21 }
  0x85   : > { %3413 = vrot.lane.b32.xlu1 %v6085_v35, %s5839_s20 }
  0x89   : > { %3592 = vrot.lane.b32.xlu1 %v5957_v10, %s5840_s21 }
  0x8d   : > { %3596 = vrot.lane.b32.xlu1 %v5969_v12, %s5840_s21 }
  0x91   : > { %3775 = vrot.lane.b32.xlu1 %v5947_v8, %s5841_s16 }
  0x97   : > { %v320_v39 = vpop.permute.xlu1 %319  ;;  %v316_v40 = vpop.permute.xlu0 %315 }
  0x98   : > { %v327_v41 = vmul.f32 %v316_v40, %v6164_v38 }
  0x9a   : > { %335 = vrot.lane.b32.xlu0 %v327_v41, %s5844_s28 }
  0x9b   : > { %v318_v43 = vpop.permute.xlu0 %317  ;;  %v285_v44 = vpop.permute.xlu1 %284 }
  0x9c   : > { %v323_v45 = vsel %vm6994_vm1, %v318_v43, %v320_v39  ;;  %v296_v46 = vmul.f32 %v285_v44, %v6164_v38  ;;  %v322_v59 = vsel %vm6994_vm1, %v316_v40, %v318_v43  ;;  %vm2184_vm1 = vcmask 588800  }
  0x9d   : > { %v329_v47 = vmul.f32 %v323_v45, %v6169_v42  ;;  %v328_v2 = vmul.f32 %v322_v59, %v6186_v61 }
  0x9e   : > { %495 = vrot.lane.b32.xlu0 %v296_v46, %s5845_s13 }
  0x9f   : > { %v287_v48 = vpop.permute.xlu0 %286  ;;  %v289_v49 = vpop.permute.xlu1 %288  ;;  %339 = vrot.lane.b32.xlu1 %v329_v47, %s5844_s28 }
  0xa0   : > { %v292_v50 = vsel %vm6993_vm2, %v287_v48, %v289_v49  ;;  %v291_v3 = vsel %vm6993_vm2, %v285_v44, %v287_v48  ;;  %vm341_vm2 = vcmask 850944  }
  0xa1   : > { %v298_v51 = vmul.f32 %v292_v50, %v6169_v42  ;;  %v297_v8 = vmul.f32 %v291_v3, %v6186_v61 }
  0xa3   : > { %v667_v52 = vpop.permute.xlu0 %666  ;;  %v669_v53 = vpop.permute.xlu1 %668  ;;  %499 = vrot.lane.b32.xlu1 %v298_v51, %s5845_s13 }
  0xa4   : > { %v678_v54 = vmul.f32 %v667_v52, %v6164_v38  ;;  %v673_v10 = vsel %vm6995_vm3, %v667_v52, %v669_v53 }
  0xa5   : > { %v679_v13 = vmul.f32 %v673_v10, %v6186_v61 }
  0xa6   : > { %686 = vrot.lane.b32.xlu0 %v678_v54, %s5846_s14 }
  0xa7   : > { %v671_v55 = vpop.permute.xlu0 %670  ;;  %v861_v56 = vpop.permute.xlu1 %860 }
  0xa8   : > { %v674_v57 = vsel %vm6995_vm3, %v669_v53, %v671_v55  ;;  %v872_v58 = vmul.f32 %v861_v56, %v6164_v38  ;;  %vm501_vm3 = vcmask 859136  }
  0xa9   : > { %v680_v60 = vmul.f32 %v674_v57, %v6169_v42 }
  0xaa   : > { %880 = vrot.lane.b32.xlu0 %v872_v58, %s5847_s15 }
  0xab   : > { %v863_v62 = vpop.permute.xlu0 %862  ;;  %v865_v63 = vpop.permute.xlu1 %864  ;;  %690 = vrot.lane.b32.xlu1 %v680_v60, %s5846_s14 }
  0xac   : > { %v868_v1 = vsel %vm6996_vm4, %v863_v62, %v865_v63  ;;  %v867_v16 = vsel %vm6996_vm4, %v861_v56, %v863_v62  ;;  %vm692_vm4 = vcmask 842752  }
  0xad   : > { %v874_v4 = vmul.f32 %v868_v1, %v6169_v42  ;;  %v873_v29 = vmul.f32 %v867_v16, %v6186_v61 }
  0xae   : > { %337 = vrot.lane.b32.xlu0 %v328_v2, %s5844_s28 }
  0xaf   : > { %884 = vrot.lane.b32.xlu1 %v874_v4, %s5847_s15  ;;  %v1221_v5 = vpop.permute.xlu1 %1220  ;;  %v1219_v6 = vpop.permute.xlu0 %1218 }
  0xb0   : > { %v1225_v46 = vsel %vm6997_vm5, %v1219_v6, %v1221_v5 }
  0xb2   : > { %497 = vrot.lane.b32.xlu0 %v297_v8, %s5845_s13 }
  0xb3   : > { %3779 = vrot.lane.b32.xlu1 %v5944_v7, %s5841_s16  ;;  %v6201_v11 = vpop.permute.xlu1 %1412  ;;  %v1223_v12 = vpop.permute.xlu0 %1222 }
  0xb4   : > { %v1226_v39 = vsel %vm6997_vm5, %v1221_v5, %v1223_v12  ;;  %vm2005_vm5 = vcmask 596992  }
  0xb5   : > { %v1232_v40 = vmul.f32 %v1226_v39, %v6169_v42 }
  0xb6   : > { %688 = vrot.lane.b32.xlu0 %v679_v13, %s5846_s14 }
  0xb7   : > { %1048 = vrot.lane.b32.xlu1 %v6169_v42, %s5848_s26  ;;  %v1417_v21 = vpop.permute.xlu1 %1416  ;;  %v1415_v24 = vpop.permute.xlu0 %1414 }
  0xb8   : > { %v1419_v55 = vsel %vm6998_vm6, %v6201_v11, %v1415_v24 }
  0xb9   : > { %v1425_v58 = vmul.f32 %v1419_v55, %v6186_v61 }
  0xba   : > { %882 = vrot.lane.b32.xlu0 %v873_v29, %s5847_s15 }
  0xbb   : > { %3958 = vrot.lane.b32.xlu1 %v5987_v14, %s5849_s27  ;;  %v1609_v7 = vpop.permute.xlu1 %1608  ;;  %v1607_v32 = vpop.permute.xlu0 %1606 }
  0xbc   : > { %v1613_v49 = vsel %vm6999_vm7, %v1607_v32, %v1609_v7  ;;  %v1618_v53 = vmul.f32 %v1607_v32, %v6164_v38 }
  0xbd   : > { %v1619_v51 = vmul.f32 %v1613_v49, %v6186_v61 }
  0xbe   : > { %3777 = vrot.lane.b32.xlu0 %v5954_v9, %s5841_s16 }
  0xbf   : > { %3962 = vrot.lane.b32.xlu1 %v6005_v17, %s5849_s27  ;;  %v1801_v41 = vpop.permute.xlu1 %1800  ;;  %v1611_v43 = vpop.permute.xlu0 %1610  ;;  %v1420_v17 = vsel %vm6998_vm6, %v1415_v24, %v1417_v21  ;;  %vm886_vm6 = vcmask 793600  }
  0xc0   : > { %v1426_v47 = vmul.f32 %v1420_v17, %v6169_v42  ;;  %v1614_v63 = vsel %vm6999_vm7, %v1609_v7, %v1611_v43  ;;  %vm1826_vm7 = vcmask 711680  }
  0xc1   : > { %v1620_v3 = vmul.f32 %v1614_v63, %v6169_v42  ;;  %v5413_v63 = vld [vmem:[%s6972_s2 + $0x10] sm:$0xff] }
  0xc2   : > { %1046 = vrot.lane.b32.xlu0 %v6186_v61, %s5848_s26 }
  0xc3   : > { %1242 = vrot.lane.b32.xlu1 %v1232_v40, %s5850_s17  ;;  %v1805_v14 = vpop.permute.xlu1 %1804  ;;  %v1803_v44 = vpop.permute.xlu0 %1802 }
  0xc4   : > { %v1807_v57 = vsel %vm7000_vm8, %v1801_v41, %v1803_v44  ;;  %v1808_v10 = vsel %vm7000_vm8, %v1803_v44, %v1805_v14  ;;  %vm1050_vm8 = vcmask 785408  }
  0xc5   : > { %v1813_v60 = vmul.f32 %v1807_v57, %v6186_v61 }
  0xc6   : > { %1044 = vrot.lane.b32.xlu0 %v6164_v38, %s5848_s26  ;;  %s7003_s26 = smov 41  }
  0xc7   : > { %4141 = vrot.lane.b32.xlu1 %v6008_v18, %s5850_s17  ;;  %v6222_v9 = vpop.permute.xlu1 %1981  ;;  %v1980_v45 = vpop.permute.xlu0 %1979  ;;  %v1231_v18 = vmul.f32 %v1225_v46, %v6186_v61 }
  0xc8   : > { %v1991_v16 = vmul.f32 %v1980_v45, %v6164_v38 }
  0xca   : > { %3960 = vrot.lane.b32.xlu0 %v5990_v15, %s5849_s27  ;;  %v1230_v15 = vmul.f32 %v1219_v6, %v6164_v38  ;;  %v1986_v6 = vsel %vm7001_vm9, %v1980_v45, %v6222_v9 }
  0xcb   : > { %4145 = vrot.lane.b32.xlu1 %v6018_v20, %s5850_s17  ;;  %v6231_v48 = vpop.permute.xlu1 %2158  ;;  %v1984_v50 = vpop.permute.xlu0 %1983 }
  0xcc   : > { %v1987_v29 = vsel %vm7001_vm9, %v6222_v9, %v1984_v50  ;;  %v5407_v50 = vld [vmem:[%s6972_s2 + $0x8] sm:$0xff]  ;;  %vm1632_vm9 = vcmask 719872  }
  0xcd   : > { %v1993_v39 = vmul.f32 %v1987_v29, %v6169_v42 }
  0xce   : > { %1240 = vrot.lane.b32.xlu0 %v1231_v18, %s5850_s17 }
  0xcf   : > { %1436 = vrot.lane.b32.xlu1 %v1426_v47, %s5849_s27  ;;  %v6238_v52 = vpop.permute.xlu1 %2162  ;;  %v6242_v20 = vpop.permute.xlu0 %2160 }
  0xd0   : > { %v2166_v43 = vsel %vm7002_vm10, %v6242_v20, %v6238_v52 }
  0xd2   : > { %1238 = vrot.lane.b32.xlu0 %v1230_v15, %s5850_s17 }
  0xd3   : > { %1628 = vrot.lane.b32.xlu1 %v1619_v51, %s5841_s16  ;;  %v6246_v54 = vpop.permute.xlu1 %2339  ;;  %v2338_v59 = vpop.permute.xlu0 %2337 }
  0xd4   : > { %v2349_v9 = vmul.f32 %v2338_v59, %v6164_v38 }
  0xd6   : > { %4143 = vrot.lane.b32.xlu0 %v6015_v19, %s5850_s17  ;;  %v1424_v19 = vmul.f32 %v6201_v11, %v6164_v38  ;;  %v1992_v11 = vmul.f32 %v1986_v6, %v6186_v61 }
  0xd7   : > { %1626 = vrot.lane.b32.xlu1 %v1618_v53, %s5841_s16  ;;  %v6253_v56 = vpop.permute.xlu1 %2516  ;;  %v6265_v1 = vpop.permute.xlu0 %2341  ;;  %v299_v53 = vld [vmem:[%s6972_s2] sm:$0xff] }
  0xd8   : > { %v2345_v47 = vsel %vm2343_vm11, %v6246_v54, %v6265_v1  ;;  %v2528_v55 = vmul.f32 %v6253_v56, %v6164_v38 }
  0xd9   : > { %v2351_v18 = vmul.f32 %v2345_v47, %v6169_v42 }
  0xda   : > { %1434 = vrot.lane.b32.xlu0 %v1425_v58, %s5849_s27 }
  0xdb   : > { %4494 = vrot.lane.b32.xlu1 %v6028_v22, %s5847_s15  ;;  %v2521_v62 = vpop.permute.xlu1 %2520  ;;  %v1812_v22 = vmul.f32 %v1801_v41, %v6164_v38  ;;  %v2519_v5 = vpop.permute.xlu0 %2518 }
  0xdc   : > { %v2524_v45 = vsel %vm2522_vm12, %v2519_v5, %v2521_v62 }
  0xde   : > { %1432 = vrot.lane.b32.xlu0 %v1424_v19, %s5849_s27 }
  0xdf   : > { %1822 = vrot.lane.b32.xlu1 %v1813_v60, %s5840_s21  ;;  %v6268_v2 = vpop.permute.xlu1 %2862  ;;  %v6288_v12 = vpop.permute.xlu0 %2860 }
  0xe2   : > { %1630 = vrot.lane.b32.xlu0 %v1620_v3, %s5841_s16  ;;  %s5851_s16 = smov 64  }
  0xe3   : > { %1820 = vrot.lane.b32.xlu1 %v1812_v22, %s5840_s21  ;;  %v6274_v4 = vpop.permute.xlu1 %3043  ;;  %v6299_v21 = vpop.permute.xlu0 %2864 }
  0xe6   : > { %4492 = vrot.lane.b32.xlu0 %v6031_v23, %s5847_s15  ;;  %v1814_v23 = vmul.f32 %v1808_v10, %v6169_v42 }
  0xe7   : > { %4677 = vrot.lane.b32.xlu1 %v6054_v28, %s5846_s14  ;;  %v6282_v8 = vpop.permute.xlu1 %3047  ;;  %v6315_v32 = vpop.permute.xlu0 %3045 }
  0xea   : > { %4496 = vrot.lane.b32.xlu0 %v6044_v26, %s5847_s15  ;;  %v2165_v26 = vsel %vm7002_vm10, %v6231_v48, %v6242_v20  ;;  %vm1438_vm10 = vcmask 728064  }
  0xeb   : > { %2001 = vrot.lane.b32.xlu1 %v1992_v11, %s5839_s20  ;;  %v6291_v13 = vpop.permute.xlu1 %3226  ;;  %v2171_v7 = vmul.f32 %v2165_v26, %v6186_v61  ;;  %v6325_v40 = vpop.permute.xlu0 %3228  ;;  %v3049_v11 = vsel %vm2363_vm15, %v6274_v4, %v6315_v32 }
  0xee   : > { %1824 = vrot.lane.b32.xlu0 %v1814_v23, %s5840_s21  ;;  %s7007_s21 = smov 31  }
  0xef   : > { %1999 = vrot.lane.b32.xlu1 %v1991_v16, %s5839_s20  ;;  %v6297_v28 = vpop.permute.xlu1 %3230  ;;  %v6341_v44 = vpop.permute.xlu0 %3411 }
  0xf0   : > { %v3233_v10 = vsel %vm2184_vm1, %v6325_v40, %v6297_v28 }
  0xf1   : > { %v3240_v16 = vmul.f32 %v3233_v10, %v6169_v42 }
  0xf2   : > { %4675 = vrot.lane.b32.xlu0 %v6041_v25, %s5846_s14  ;;  %v2170_v25 = vmul.f32 %v6231_v48, %v6164_v38 }
  0xf3   : > { %4860 = vrot.lane.b32.xlu1 %v6062_v30, %s5844_s28  ;;  %v6308_v24 = vpop.permute.xlu1 %3409  ;;  %v6351_v17 = vpop.permute.xlu0 %3594 }
  0xf6   : > { %4679 = vrot.lane.b32.xlu0 %v6051_v27, %s5846_s14  ;;  %v2344_v27 = vsel %vm2343_vm11, %v2338_v59, %v6246_v54  ;;  %v6388_v54 = vld [vmem:[%s6158_s23 + $0x18] sm:$0xff]  ;;  %v3050_v59 = vsel %vm2363_vm15, %v6315_v32, %v6282_v8  ;;  %s7009_s14 = smov 24  }
  0xf7   : > { %2180 = vrot.lane.b32.xlu1 %v2171_v7, %s5838_s19  ;;  %v6321_v30 = vpop.permute.xlu1 %3413  ;;  %v2350_v14 = vmul.f32 %v2344_v27, %v6186_v61  ;;  %v2875_v58 = vmul.f32 %v6299_v21, %v6388_v54  ;;  %v3057_v62 = vmul.f32 %v3050_v59, %v6169_v42  ;;  %v3058_v3 = vmul.f32 %v6282_v8, %v6388_v54 }
  0xf8   : > { %v2872_v8 = vmul.f32 %v6288_v12, %v6164_v38  ;;  %v3056_v7 = vmul.f32 %v3049_v11, %v6186_v61 }
  0xfa   : > { %2003 = vrot.lane.b32.xlu0 %v1993_v39, %s5839_s20  ;;  %v3241_v39 = vmul.f32 %v6297_v28, %v6388_v54  ;;  %v3055_v28 = vmul.f32 %v6274_v4, %v6164_v38  ;;  %v5420_v4 = vld [vmem:[%s6972_s2 + $0x20] sm:$0xff]  ;;  %s5852_s20 = smov 32  }
  0xfb   : > { %2178 = vrot.lane.b32.xlu1 %v2170_v25, %s5838_s19  ;;  %v6333_v41 = vpop.permute.xlu1 %3592 }
  0xfe   : > { %4858 = vrot.lane.b32.xlu0 %v6067_v31, %s5844_s28  ;;  %v2172_v31 = vmul.f32 %v2166_v43, %v6169_v42 }
  0xff   : > { %5043 = vrot.lane.b32.xlu1 %v6090_v36, %s5845_s13  ;;  %v6346_v36 = vpop.permute.xlu1 %3596 }
 0x102   : > { %4862 = vrot.lane.b32.xlu0 %v6080_v34, %s5844_s28  ;;  %v2530_v34 = vmul.f32 %v2524_v45, %v6169_v42 }
 0x103   : > { %2359 = vrot.lane.b32.xlu1 %v2350_v14, %s5837_s18  ;;  %v6357_v46 = vpop.permute.xlu1 %3775  ;;  %v3416_v14 = vsel %vm2005_vm5, %v6341_v44, %v6321_v30 }
 0x104   : > { %v3423_v45 = vmul.f32 %v3416_v14, %v6169_v42 }
 0x106   : > { %2182 = vrot.lane.b32.xlu0 %v2172_v31, %s5838_s19  ;;  %v3232_v31 = vsel %vm2184_vm1, %v6291_v13, %v6325_v40 }
 0x107   : > { %2357 = vrot.lane.b32.xlu1 %v2349_v9, %s5837_s18  ;;  %v3239_v40 = vmul.f32 %v3232_v31, %v6186_v61 }
 0x10a   : > { %5041 = vrot.lane.b32.xlu0 %v6075_v33, %s5845_s13  ;;  %v2523_v33 = vsel %vm2522_vm12, %v6253_v56, %v2519_v5  ;;  %v2866_v56 = vsel %vm2542_vm13, %v6288_v12, %v6268_v2  ;;  %v5417_v12 = vld [vmem:[%s6972_s2 + $0x18] sm:$0xff] }
 0x10b   : > { %2540 = vrot.lane.b32.xlu1 %v2530_v34, %s5836_s12  ;;  %v2529_v51 = vmul.f32 %v2523_v33, %v6186_v61  ;;  %v2873_v1 = vmul.f32 %v2866_v56, %v6186_v61  ;;  %v3424_v33 = vmul.f32 %v6321_v30, %v6388_v54  ;;  %v3598_v56 = vsel %vm1826_vm7, %v6333_v41, %v6351_v17 }
 0x10c   : > { %v336_v48 = vpop.permute.xlu0 %335 }
 0x10e   : > { %5045 = vrot.lane.b32.xlu0 %v6085_v35, %s5845_s13  ;;  %v2867_v35 = vsel %vm2542_vm13, %v6268_v2, %v6299_v21 }
 0x10f   : > { %2699 = vrot.lane.b32.xlu1 %v6186_v61, %s5851_s16  ;;  %v2874_v15 = vmul.f32 %v2867_v35, %v6169_v42  ;;  %v3238_v35 = vmul.f32 %v6291_v13, %v6164_v38 }
 0x110   : > { %v496_v52 = vpop.permute.xlu0 %495 }
 0x111   : > { %v340_v49 = vpop.permute.xlu1 %339 }
 0x112   : > { %5555 = vmatpush3.msra.mxu1 %v340_v49  ;;  %2361 = vrot.lane.b32.xlu0 %v2351_v18, %s5837_s18 }
 0x113   : > { %2697 = vrot.lane.b32.xlu1 %v6164_v38, %s5851_s16  ;;  %5559 = vmatprep.subr.mxu1 %v5842_v37 }
 0x114   : > { %5557 = vmatmul.mubr.msk.f32.vlgmr.msra.gmra.mxu1 %vm347_vm14, %v5407_v50 }
 0x115   : > { %v500_v20 = vpop.permute.xlu1 %499  ;;  %5561 = vmatprep.mubr.msk.f32.mxu1 %vm5843_vm0, %v5842_v37 }
 0x116   : > { %5560 = vmatpush3.msra.mxu1 %v500_v20  ;;  %2538 = vrot.lane.b32.xlu0 %v2529_v51, %s5836_s12  ;;  %v3415_v51 = vsel %vm2005_vm5, %v6308_v24, %v6341_v44  ;;  %v3607_v44 = vmul.f32 %v6346_v36, %v6388_v54 }
 0x117   : > { %2886 = vrot.lane.b32.xlu1 %v2874_v15, %s5835_s11  ;;  %5564 = vmatprep.subr.mxu1 %v5842_v37  ;;  %v3422_v13 = vmul.f32 %v3415_v51, %v6186_v61 }
 0x118   : > { %v687_v57 = vpop.permute.xlu0 %686  ;;  %5562 = vmatmul.mubr.msk.f32.vlgmr.msra.gmra.mxu1 %vm347_vm14, %v299_v53 }
 0x119   : > { %5566 = vmatprep.mubr.msk.f32.mxu1 %vm5843_vm0, %v5842_v37 }
 0x11a   : > { %2536 = vrot.lane.b32.xlu0 %v2528_v55, %s5836_s12  ;;  %s7008_s12 = smov 25  }
 0x11b   : > { %2888 = vrot.lane.b32.xlu1 %v2875_v58, %s5835_s11 }
 0x11c   : > { %v6405_v60 = vpop.permute.xlu0 %880 }
 0x11d   : > { %v691_v19 = vpop.permute.xlu1 %690 }
 0x11e   : > { %5565 = vmatpush3.msra.mxu1 %v691_v19  ;;  %2701 = vrot.lane.b32.xlu0 %v6169_v42, %s5851_s16  ;;  %s7006_s16 = smov 33  }
 0x11f   : > { %3069 = vrot.lane.b32.xlu1 %v3057_v62, %s5834_s10  ;;  %5569 = vmatprep.subr.mxu1 %v5842_v37 }
 0x120   : > { %v338_v2 = vpop.permute.xlu0 %337  ;;  %5567 = vmatmul.mubr.msk.f32.vlgmr.msra.gmra.mxu1 %vm347_vm14, %v5413_v63 }
 0x121   : > { %v885_v22 = vpop.permute.xlu1 %884  ;;  %v343_v5 = vsel %vm341_vm2, %v338_v2, %v340_v49  ;;  %v342_v6 = vsel %vm341_vm2, %v336_v48, %v338_v2  ;;  %5571 = vmatprep.mubr.msk.f32.mxu1 %vm5843_vm0, %v5842_v37 }
 0x122   : > { %2884 = vrot.lane.b32.xlu0 %v2873_v1, %s5835_s11  ;;  %381 = vmatprep.subr.mxu0 %v343_v5  ;;  %v3604_v5 = vmul.f32 %v6333_v41, %v6164_v38 }
 0x123   : > { %3071 = vrot.lane.b32.xlu1 %v3058_v3, %s5834_s10  ;;  %382 = vmatpush1.msra.mxu0 %v342_v6 }
 0x124   : > { %v498_v23 = vpop.permute.xlu0 %497  ;;  %5408 = vmatmul.mubr.msk.f32.vlgmr.msra.gmra.mxu0 %vm347_vm14, %v5407_v50  ;;  %5570 = vmatpush3.msra.mxu1 %v885_v22  ;;  %v3599_v50 = vsel %vm1826_vm7, %v6351_v17, %v6346_v36  ;;  %v3421_v36 = vmul.f32 %v6308_v24, %v6164_v38  ;;  %v5428_v17 = vld [vmem:[%s6972_s2 + $0x30] sm:$0xff] }
 0x125   : > { %v6438_v21 = vpop.permute.xlu1 %3779  ;;  %v503_v26 = vsel %vm501_vm3, %v498_v23, %v500_v20  ;;  %v502_v29 = vsel %vm501_vm3, %v496_v52, %v498_v23  ;;  %574 = vmatprep.mubr.f32.mxu0 %v5842_v37  ;;  %5574 = vmatprep.subr.mxu1 %v5842_v37  ;;  %v3606_v52 = vmul.f32 %v3599_v50, %v6169_v42 }
 0x126   : > { %2882 = vrot.lane.b32.xlu0 %v2872_v8, %s5835_s11  ;;  %540 = vmatprep.subr.mxu0 %v503_v26  ;;  %v3790_v24 = vmul.f32 %v6438_v21, %v6388_v54 }
 0x127   : > { %3252 = vrot.lane.b32.xlu1 %v3240_v16, %s5833_s9  ;;  %541 = vmatpush1.msra.mxu0 %v502_v29 }
 0x128   : > { %v689_v32 = vpop.permute.xlu0 %688  ;;  %5410 = vmatmul.mubr.msk.f32.vlgmr.msra.gmra.mxu0 %vm347_vm14, %v299_v53  ;;  %5572 = vmatmul.mubr.msk.f32.vlgmr.msra.gmra.mxu1 %vm347_vm14, %v5417_v12  ;;  %v5424_v53 = vld [vmem:[%s6972_s2 + $0x28] sm:$0xff] }
 0x129   : > { %v1049_v25 = vpop.permute.xlu1 %1048  ;;  %v694_v27 = vsel %vm692_vm4, %v689_v32, %v691_v19  ;;  %v693_v43 = vsel %vm692_vm4, %v687_v57, %v689_v32  ;;  %765 = vmatprep.mubr.f32.mxu0 %v5842_v37  ;;  %5576 = vmatprep.mubr.msk.f32.mxu1 %vm5843_vm0, %v5842_v37 }
 0x12a   : > { %3067 = vrot.lane.b32.xlu0 %v3056_v7, %s5834_s10  ;;  %731 = vmatprep.subr.mxu0 %v694_v27 }
 0x12b   : > { %3254 = vrot.lane.b32.xlu1 %v3241_v39, %s5833_s9  ;;  %732 = vmatpush1.msra.mxu0 %v693_v43 }
 0x12c   : > { %v883_v9 = vpop.permute.xlu0 %882  ;;  %5414 = vmatmul.mubr.msk.f32.vlgmr.msra.gmra.mxu0 %vm347_vm14, %v5413_v63  ;;  %5575 = vmatpush3.msra.mxu1 %v1049_v25  ;;  %v3605_v63 = vmul.f32 %v3598_v56, %v6186_v61 }
 0x12d   : > { %v6471_v34 = vpop.permute.xlu1 %3958  ;;  %v888_v47 = vsel %vm886_vm6, %v883_v9, %v885_v22  ;;  %v887_v48 = vsel %vm886_vm6, %v6405_v60, %v883_v9  ;;  %959 = vmatprep.mubr.f32.mxu0 %v5842_v37  ;;  %5579 = vmatprep.subr.mxu1 %v5842_v37 }
 0x12e   : > { %3065 = vrot.lane.b32.xlu0 %v3055_v28, %s5834_s10  ;;  %925 = vmatprep.subr.mxu0 %v888_v47  ;;  %v3970_v9 = vmul.f32 %v6471_v34, %v6164_v38 }
 0x12f   : > { %3435 = vrot.lane.b32.xlu1 %v3423_v45, %s5832_s24  ;;  %926 = vmatpush1.msra.mxu0 %v887_v48 }
 0x130   : > { %v3778_v18 = vpop.permute.xlu0 %3777  ;;  %5418 = vmatmul.mubr.msk.f32.vlgmr.msra.gmra.mxu0 %vm347_vm14, %v5417_v12  ;;  %5577 = vmatmul.mubr.msk.f32.vlgmr.msra.gmra.mxu1 %vm347_vm14, %v5420_v4  ;;  %v3787_v12 = vmul.f32 %v6357_v46, %v6164_v38 }
 0x131   : > { %v6488_v49 = vpop.permute.xlu1 %3962  ;;  %1123 = vmatprep.mubr.f32.mxu0 %v5842_v37  ;;  %5581 = vmatprep.mubr.msk.f32.mxu1 %vm5843_vm0, %v5842_v37  ;;  %v3782_v59 = vsel %vm1632_vm9, %v3778_v18, %v6438_v21  ;;  %v3781_v10 = vsel %vm1632_vm9, %v6357_v46, %v3778_v18 }
 0x132   : > { %3250 = vrot.lane.b32.xlu0 %v3239_v40, %s5833_s9  ;;  %v3789_v62 = vmul.f32 %v3782_v59, %v6169_v42  ;;  %v3788_v41 = vmul.f32 %v3781_v10, %v6186_v61  ;;  %v3973_v21 = vmul.f32 %v6488_v49, %v6388_v54  ;;  %v5432_v40 = vld [vmem:[%s6972_s2 + $0x38] sm:$0xff] }
 0x133   : > { %3437 = vrot.lane.b32.xlu1 %v3424_v33, %s5832_s24 }
 0x134   : > { %v1047_v30 = vpop.permute.xlu0 %1046 }
 0x135   : > { %v1243_v15 = vpop.permute.xlu1 %1242  ;;  %v1052_v20 = vsel %vm1050_vm8, %v1047_v30, %v1049_v25 }
 0x136   : > { %3248 = vrot.lane.b32.xlu0 %v3238_v35, %s5833_s9  ;;  %1089 = vmatprep.subr.mxu0 %v1052_v20  ;;  %s7004_s9 = smov 40  }
 0x137   : > { %3618 = vrot.lane.b32.xlu1 %v3606_v52, %s7003_s26  ;;  %5580 = vmatpush3.msra.mxu1 %v1243_v15 }
 0x138   : > { %v1045_v55 = vpop.permute.xlu0 %1044  ;;  %5584 = vmatprep.subr.mxu1 %v5842_v37  ;;  %5582 = vmatmul.mubr.msk.f32.vlgmr.msra.gmra.mxu1 %vm347_vm14, %v5424_v53 }
 0x139   : > { %v1051_v57 = vsel %vm1050_vm8, %v1045_v55, %v1047_v30  ;;  %v6516_v58 = vpop.permute.xlu1 %4141  ;;  %5586 = vmatprep.mubr.msk.f32.mxu1 %vm5843_vm0, %v5842_v37  ;;  %vm1244_vm8 = vcmask 777216  }
 0x13a   : > { %3433 = vrot.lane.b32.xlu0 %v3422_v13, %s5832_s24  ;;  %1090 = vmatpush1.msra.mxu0 %v1051_v57  ;;  %v4153_v50 = vmul.f32 %v6516_v58, %v6164_v38  ;;  %v5436_v13 = vld [vmem:[%s6972_s2 + $0x40] sm:$0xff] }
 0x13b   : > { %3620 = vrot.lane.b32.xlu1 %v3607_v44, %s7003_s26  ;;  %5421 = vmatmul.mubr.msk.f32.vlgmr.msra.gmra.mxu0 %vm347_vm14, %v5420_v4 }
 0x13c   : > { %v3961_v60 = vpop.permute.xlu0 %3960  ;;  %1317 = vmatprep.mubr.f32.mxu0 %v5842_v37 }
 0x13d   : > { %v4146_v19 = vpop.permute.xlu1 %4145  ;;  %v3965_v22 = vsel %vm1438_vm10, %v3961_v60, %v6488_v49  ;;  %v3964_v32 = vsel %vm1438_vm10, %v6471_v34, %v3961_v60 }
 0x13e   : > { %3431 = vrot.lane.b32.xlu0 %v3421_v36, %s5832_s24  ;;  %v3972_v8 = vmul.f32 %v3965_v22, %v6169_v42  ;;  %s7005_s24 = smov 39   ;;  %v3971_v43 = vmul.f32 %v3964_v32, %v6186_v61  ;;  %v4156_v28 = vmul.f32 %v4146_v19, %v6388_v54 }
 0x13f   : > { %3801 = vrot.lane.b32.xlu1 %v3789_v62, %s7004_s9 }
 0x140   : > { %v1241_v1 = vpop.permute.xlu0 %1240 }
 0x141   : > { %v1437_v2 = vpop.permute.xlu1 %1436  ;;  %v1246_v3 = vsel %vm1244_vm8, %v1241_v1, %v1243_v15 }
 0x142   : > { %3616 = vrot.lane.b32.xlu0 %v3605_v63, %s7003_s26  ;;  %1283 = vmatprep.subr.mxu0 %v1246_v3 }
 0x143   : > { %3803 = vrot.lane.b32.xlu1 %v3790_v24, %s7004_s9  ;;  %5585 = vmatpush3.msra.mxu1 %v1437_v2 }
 0x144   : > { %v1239_v6 = vpop.permute.xlu0 %1238  ;;  %5589 = vmatprep.subr.mxu1 %v5842_v37  ;;  %5587 = vmatmul.mubr.msk.f32.vlgmr.msra.gmra.mxu1 %vm347_vm14, %v5428_v17 }
 0x145   : > { %v1245_v11 = vsel %vm1244_vm8, %v1239_v6, %v1241_v1  ;;  %v1629_v23 = vpop.permute.xlu1 %1628  ;;  %5591 = vmatprep.mubr.msk.f32.mxu1 %vm5843_vm0, %v5842_v37 }
 0x146   : > { %3614 = vrot.lane.b32.xlu0 %v3604_v5, %s7003_s26  ;;  %1284 = vmatpush1.msra.mxu0 %v1245_v11  ;;  %s7010_s26 = smov 23  }
 0x147   : > { %3984 = vrot.lane.b32.xlu1 %v3972_v8, %s7005_s24  ;;  %5425 = vmatmul.mubr.msk.f32.vlgmr.msra.gmra.mxu0 %vm347_vm14, %v5424_v53 }
 0x148   : > { %v4144_v16 = vpop.permute.xlu0 %4143  ;;  %1511 = vmatprep.mubr.f32.mxu0 %v5842_v37 }
 0x149   : > { %v1627_v26 = vpop.permute.xlu1 %1626  ;;  %v4148_v29 = vsel %vm1244_vm8, %v4144_v16, %v4146_v19  ;;  %v4147_v47 = vsel %vm1244_vm8, %v6516_v58, %v4144_v16 }
 0x14a   : > { %3799 = vrot.lane.b32.xlu0 %v3788_v41, %s7004_s9  ;;  %v4155_v39 = vmul.f32 %v4148_v29, %v6169_v42  ;;  %v1633_v18 = vsel %vm1632_vm9, %v1627_v26, %v1629_v23  ;;  %v4154_v34 = vmul.f32 %v4147_v47, %v6186_v61 }
 0x14b   : > { %3986 = vrot.lane.b32.xlu1 %v3973_v21, %s7005_s24 }
 0x14c   : > { %v1435_v7 = vpop.permute.xlu0 %1434 }
 0x14d   : > { %v4495_v25 = vpop.permute.xlu1 %4494  ;;  %v1440_v27 = vsel %vm1438_vm10, %v1435_v7, %v1437_v2 }
 0x14e   : > { %3797 = vrot.lane.b32.xlu0 %v3787_v12, %s7004_s9  ;;  %1477 = vmatprep.subr.mxu0 %v1440_v27 }
 0x14f   : > { %4167 = vrot.lane.b32.xlu1 %v4155_v39, %s7006_s16 }
 0x150   : > { %v1433_v14 = vpop.permute.xlu0 %1432 }
 0x151   : > { %v1439_v46 = vsel %vm1438_vm10, %v1433_v14, %v1435_v7  ;;  %v1823_v31 = vpop.permute.xlu1 %1822  ;;  %v5442_v7 = vld [vmem:[%s6972_s2 + $0x50] sm:$0xff] }
 0x152   : > { %3982 = vrot.lane.b32.xlu0 %v3971_v43, %s7005_s24  ;;  %1478 = vmatpush1.msra.mxu0 %v1439_v46 }
 0x153   : > { %4169 = vrot.lane.b32.xlu1 %v4156_v28, %s7006_s16  ;;  %5429 = vmatmul.mubr.msk.f32.vlgmr.msra.gmra.mxu0 %vm347_vm14, %v5428_v17  ;;  %v5439_v17 = vld [vmem:[%s6972_s2 + $0x48] sm:$0xff] }
 0x154   : > { %v1631_v45 = vpop.permute.xlu0 %1630  ;;  %1705 = vmatprep.mubr.f32.mxu0 %v5842_v37 }
 0x155   : > { %v1821_v48 = vpop.permute.xlu1 %1820  ;;  %5590 = vmatpush3.msra.mxu1 %v1631_v45  ;;  %v1634_v4 = vsel %vm1632_vm9, %v1629_v23, %v1631_v45 }
 0x156   : > { %3980 = vrot.lane.b32.xlu0 %v3970_v9, %s7005_s24  ;;  %1671 = vmatprep.subr.mxu0 %v1634_v4  ;;  %v1827_v55 = vsel %vm1826_vm7, %v1821_v48, %v1823_v31  ;;  %v5768_v4 = vld [vmem:[%s6158_s23] sm:$0xff] }
 0x157   : > { %4334 = vrot.lane.b32.xlu1 %v6169_v42, %s5852_s20  ;;  %1672 = vmatpush1.msra.mxu0 %v1633_v18 }
 0x158   : > { %v4493_v33 = vpop.permute.xlu0 %4492  ;;  %5594 = vmatprep.subr.mxu1 %v5842_v37  ;;  %5592 = vmatmul.mubr.msk.f32.vlgmr.msra.gmra.mxu1 %vm347_vm14, %v5432_v40 }
 0x159   : > { %v4678_v49 = vpop.permute.xlu1 %4677  ;;  %5433 = vmatmul.mubr.msk.f32.vlgmr.msra.gmra.mxu0 %vm347_vm14, %v5432_v40  ;;  %5596 = vmatprep.mubr.msk.f32.mxu1 %vm5843_vm0, %v5842_v37  ;;  %v4498_v58 = vsel %vm886_vm6, %v4493_v33, %v4495_v25  ;;  %v4504_v63 = vmul.f32 %v4493_v33, %v6164_v38 }
 0x15a   : > { %4165 = vrot.lane.b32.xlu0 %v4154_v34, %s7006_s16  ;;  %1899 = vmatprep.mubr.f32.mxu0 %v5842_v37  ;;  %v4505_v36 = vmul.f32 %v4498_v58, %v6186_v61 }
 0x15b   : > { %4336 = vrot.lane.b32.xlu1 %v6388_v54, %s5852_s20 }
 0x15c   : > { %v4497_v35 = vpop.permute.xlu0 %4496 }
 0x15d   : > { %v4499_v30 = vsel %vm886_vm6, %v4495_v25, %v4497_v35  ;;  %v2002_v51 = vpop.permute.xlu1 %2001  ;;  %v4507_v44 = vmul.f32 %v4497_v35, %v6388_v54 }
 0x15e   : > { %v4506_v52 = vmul.f32 %v4499_v30, %v6169_v42  ;;  %4163 = vrot.lane.b32.xlu0 %v4153_v50, %s7006_s16 }
 0x160   : > { %4518 = vrot.lane.b32.xlu1 %v4506_v52, %s7007_s21  ;;  %v1825_v15 = vpop.permute.xlu0 %1824 }
 0x161   : > { %v2000_v20 = vpop.permute.xlu1 %1999  ;;  %5595 = vmatpush3.msra.mxu1 %v1825_v15  ;;  %v1828_v53 = vsel %vm1826_vm7, %v1823_v31, %v1825_v15  ;;  %v5853_v31 = vmov 0   ;;  %vm7016_vm7 = vcmask 334848  }
 0x162   : > { %4332 = vrot.lane.b32.xlu0 %v6186_v61, %s5852_s20  ;;  %1865 = vmatprep.subr.mxu0 %v1828_v53  ;;  %v2006_v22 = vsel %vm2005_vm5, %v2000_v20, %v2002_v51  ;;  %vm7018_vm10 = vmmov %vm7016_vm7 }
 0x163   : > { %1866 = vmatpush1.msra.mxu0 %v1827_v55  ;;  %5599 = vmatprep.subr.mxu1 %v5842_v37 }
 0x164   : > { %4520 = vrot.lane.b32.xlu1 %v4507_v44, %s7007_s21  ;;  %v4676_v57 = vpop.permute.xlu0 %4675  ;;  %5597 = vmatmul.mubr.msk.f32.vlgmr.msra.gmra.mxu1 %vm347_vm14, %v5436_v13 }
 0x165   : > { %v4861_v59 = vpop.permute.xlu1 %4860  ;;  %5437 = vmatmul.mubr.msk.f32.vlgmr.msra.gmra.mxu0 %vm347_vm14, %v5436_v13  ;;  %5601 = vmatprep.mubr.msk.f32.mxu1 %vm5843_vm0, %v5842_v37  ;;  %v4681_v24 = vsel %vm692_vm4, %v4676_v57, %v4678_v49  ;;  %v4687_v11 = vmul.f32 %v4676_v57, %v6164_v38  ;;  %v5451_v13 = vld [vmem:[%s6972_s2 + $0x68] sm:$0xff] }
 0x166   : > { %4330 = vrot.lane.b32.xlu0 %v6164_v38, %s5852_s20  ;;  %2078 = vmatprep.mubr.f32.mxu0 %v5842_v37  ;;  %v4688_v6 = vmul.f32 %v4681_v24, %v6186_v61 }
 0x167   : > { %5763 = vset.pattern.permute.xlu0 %v5853_v31 }
 0x168   : > { %v4680_v60 = vpop.permute.xlu0 %4679 }
 0x169   : > { %v4682_v56 = vsel %vm692_vm4, %v4678_v49, %v4680_v60  ;;  %v2181_v62 = vpop.permute.xlu1 %2180  ;;  %v4690_v5 = vmul.f32 %v4680_v60, %v6388_v54  ;;  %vm7013_vm4 = vcmask 449536  }
 0x16a   : > { %v4689_v19 = vmul.f32 %v4682_v56, %v6169_v42  ;;  %4516 = vrot.lane.b32.xlu0 %v4505_v36, %s7007_s21  ;;  %v5454_v36 = vld [vmem:[%s6972_s2 + $0x70] sm:$0xff]  ;;  %vm7015_vm6 = vmmov %vm7013_vm4 }
 0x16b   : > { %vm7017_vm9 = vmmov %vm7013_vm4 }
 0x16c   : > { %4701 = vrot.lane.b32.xlu1 %v4689_v19, %s7008_s12  ;;  %v2004_v1 = vpop.permute.xlu0 %2003 }
 0x16d   : > { %v2179_v2 = vpop.permute.xlu1 %2178  ;;  %5600 = vmatpush3.msra.mxu1 %v2004_v1  ;;  %v2007_v3 = vsel %vm2005_vm5, %v2002_v51, %v2004_v1  ;;  %v5224_v51 = vld [vmem:[%s6974_s4] sm:$0xff] }
 0x16e   : > { %4514 = vrot.lane.b32.xlu0 %v4504_v63, %s7007_s21  ;;  %2044 = vmatprep.subr.mxu0 %v2007_v3  ;;  %v2185_v25 = vsel %vm2184_vm1, %v2179_v2, %v2181_v62  ;;  %v5457_v63 = vld [vmem:[%s6972_s2 + $0x78] sm:$0xff] }
 0x16f   : > { %2045 = vmatpush1.msra.mxu0 %v2006_v22  ;;  %5604 = vmatprep.subr.mxu1 %v5842_v37  ;;  %v5460_v22 = vld [vmem:[%s6972_s2 + $0x80] sm:$0xff] }
 0x170   : > { %4703 = vrot.lane.b32.xlu1 %v4690_v5, %s7008_s12  ;;  %v4859_v10 = vpop.permute.xlu0 %4858  ;;  %5602 = vmatmul.mubr.msk.f32.vlgmr.msra.gmra.mxu1 %vm347_vm14, %v5439_v17 }
 0x171   : > { %v5044_v8 = vpop.permute.xlu1 %5043  ;;  %5440 = vmatmul.mubr.msk.f32.vlgmr.msra.gmra.mxu0 %vm347_vm14, %v5439_v17  ;;  %5606 = vmatprep.mubr.msk.f32.mxu1 %vm5843_vm0, %v5842_v37  ;;  %v4864_v41 = vsel %vm341_vm2, %v4859_v10, %v4861_v59  ;;  %v4870_v43 = vmul.f32 %v4859_v10, %v6164_v38 }
 0x172   : > { %4699 = vrot.lane.b32.xlu0 %v4688_v6, %s7008_s12  ;;  %2257 = vmatprep.mubr.f32.mxu0 %v5842_v37  ;;  %v4871_v29 = vmul.f32 %v4864_v41, %v6186_v61 }
 0x174   : > { %v4863_v23 = vpop.permute.xlu0 %4862 }
 0x175   : > { %v4865_v16 = vsel %vm341_vm2, %v4861_v59, %v4863_v23  ;;  %v2360_v21 = vpop.permute.xlu1 %2359  ;;  %v4873_v27 = vmul.f32 %v4863_v23, %v6388_v54  ;;  %vm7011_vm2 = vcmask 457728  }
 0x176   : > { %v4872_v26 = vmul.f32 %v4865_v16, %v6169_v42  ;;  %4697 = vrot.lane.b32.xlu0 %v4687_v11, %s7008_s12  ;;  %v5463_v16 = vld [vmem:[%s6972_s2 + $0x88] sm:$0xff]  ;;  %vm7014_vm5 = vmmov %vm7011_vm2 }
 0x178   : > { %4884 = vrot.lane.b32.xlu1 %v4872_v26, %s7009_s14  ;;  %v2183_v12 = vpop.permute.xlu0 %2182 }
 0x179   : > { %v2358_v32 = vpop.permute.xlu1 %2357  ;;  %5605 = vmatpush3.msra.mxu1 %v2183_v12  ;;  %v2186_v39 = vsel %vm2184_vm1, %v2181_v62, %v2183_v12  ;;  %vm2703_vm1 = vcmask 523264  }
 0x17a   : > { %4882 = vrot.lane.b32.xlu0 %v4871_v29, %s7009_s14  ;;  %2223 = vmatprep.subr.mxu0 %v2186_v39  ;;  %v2364_v49 = vsel %vm2363_vm15, %v2358_v32, %v2360_v21 }
 0x17b   : > { %2224 = vmatpush1.msra.mxu0 %v2185_v25  ;;  %5607 = vmatmul.mubr.msk.f32.vlgmr.msra.gmra.mxu1 %vm347_vm14, %v5442_v7  ;;  %v5466_v25 = vld [vmem:[%s6972_s2 + $0x90] sm:$0xff] }
 0x17c   : > { %4886 = vrot.lane.b32.xlu1 %v4873_v27, %s7009_s14  ;;  %v5042_v14 = vpop.permute.xlu0 %5041  ;;  %5609 = vmatprep.subr.mxu1 %v5842_v37 }
 0x17d   : > { %v5047_v28 = vsel %vm501_vm3, %v5042_v14, %v5044_v8  ;;  %v2541_v46 = vpop.permute.xlu1 %2540  ;;  %5611 = vmatprep.mubr.msk.f32.mxu1 %vm5843_vm0, %v5842_v37  ;;  %5443 = vmatmul.mubr.msk.f32.vlgmr.msra.gmra.mxu0 %vm347_vm14, %v5442_v7  ;;  %v5053_v40 = vmul.f32 %v5768_v4, %v5042_v14 }
 0x17e   : > { %4880 = vrot.lane.b32.xlu0 %v4870_v43, %s7009_s14  ;;  %2436 = vmatprep.mubr.f32.mxu0 %v5842_v37  ;;  %v5054_v38 = vmul.f32 %v5047_v28, %v6186_v61  ;;  %v5445_v61 = vld [vmem:[%s6972_s2 + $0x58] sm:$0xff]  ;;  %s6907_s14 = sld [smem:[#allocation3 + %s5809_s0]] }
 0x180   : > { %v5046_v9 = vpop.permute.xlu0 %5045 }
 0x181   : > { %v5048_v45 = vsel %vm501_vm3, %v5044_v8, %v5046_v9  ;;  %v2700_v47 = vpop.permute.xlu1 %2699  ;;  %v5056_v50 = vmul.f32 %v5046_v9, %v6388_v54  ;;  %v5448_v54 = vld [vmem:[%s6972_s2 + $0x60] sm:$0xff]  ;;  %vm7012_vm3 = vmmov %vm7011_vm2  ;;  %v5469_v9 = vld [vmem:[%s6972_s2 + $0x98] sm:$0xff] }
 0x182   : > { %v5055_v48 = vmul.f32 %v5048_v45, %v6169_v42  ;;  %5065 = vrot.lane.b32.xlu0 %v5054_v38, %s7010_s26 }
 0x184   : > { %5067 = vrot.lane.b32.xlu1 %v5055_v48, %s7010_s26  ;;  %v2362_v18 = vpop.permute.xlu0 %2361  ;;  %s5248_s10 = scvt.s32.f32 %s6907_s14 }
 0x185   : > { %v2698_v34 = vpop.permute.xlu1 %2697  ;;  %5610 = vmatpush3.msra.mxu1 %v2362_v18  ;;  %v2365_v33 = vsel %vm2363_vm15, %v2360_v21, %v2362_v18  ;;  %vm7022_vm15 = vcmask 318464  }
 0x186   : > { %5063 = vrot.lane.b32.xlu0 %v5053_v40, %s7010_s26  ;;  %2402 = vmatprep.subr.mxu0 %v2365_v33  ;;  %v2704_v57 = vsel %vm2703_vm1, %v2698_v34, %v2700_v47  ;;  %v5472_v33 = vld [vmem:[%s6972_s2 + $0xa0] sm:$0xff] }
 0x187   : > { %5614 = vmatprep.subr.mxu1 %v5842_v37  ;;  %2403 = vmatpush1.msra.mxu0 %v2364_v49 }
 0x188   : > { %5612 = vmatmul.mubr.msk.f32.vlgmr.msra.gmra.mxu1 %vm347_vm14, %v5445_v61  ;;  %5069 = vrot.lane.b32.xlu1 %v5056_v50, %s7010_s26  ;;  %v2539_v42 = vpop.permute.xlu0 %2538  ;;  %s5281_s26 = sld [smem:[#allocation4]] }
 0x189   : > { %5615 = vmatpush3.msra.mxu1 %v2541_v46  ;;  %v2887_v35 = vpop.permute.xlu1 %2886  ;;  %v2544_v30 = vsel %vm2542_vm13, %v2539_v42, %v2541_v46  ;;  %5446 = vmatmul.mubr.msk.f32.vlgmr.msra.gmra.mxu0 %vm347_vm14, %v5445_v61 }
 0x18a   : > { %2581 = vmatprep.subr.mxu0 %v2544_v30  ;;  %5616 = vmatprep.mubr.msk.f32.mxu1 %vm5843_vm0, %v5842_v37 }
 0x18b   : > { %5619 = vmatprep.subr.mxu1 %v5842_v37  ;;  %2615 = vmatprep.mubr.f32.mxu0 %v5842_v37 }
 0x18c   : > { %v2537_v52 = vpop.permute.xlu0 %2536  ;;  %5617 = vmatmul.mubr.msk.f32.vlgmr.msra.gmra.mxu1 %vm347_vm14, %v5448_v54  ;;  %5227 = vperm.xlu0 %5763, %v5224_v51   ;;  %v5475_v51 = vld [vmem:[%s6972_s2 + $0xa8] sm:$0xff] }
 0x18d   : > { %v2543_v15 = vsel %vm2542_vm13, %v2537_v52, %v2539_v42  ;;  %v2889_v20 = vpop.permute.xlu1 %2888  ;;  %5621 = vmatprep.mubr.msk.f32.mxu1 %vm5843_vm0, %v5842_v37 }
 0x18e   : > { %2582 = vmatpush1.msra.mxu0 %v2543_v15  ;;  %v2892_v58 = vsel %vm2522_vm12, %v2887_v35, %v2889_v20 }
 0x18f   : > { %5449 = vmatmul.mubr.msk.f32.vlgmr.msra.gmra.mxu0 %vm347_vm14, %v5448_v54 }
 0x190   : > { %v2702_v53 = vpop.permute.xlu0 %2701  ;;  %2776 = vmatprep.mubr.f32.mxu0 %v5842_v37 }
 0x191   : > { %v3070_v55 = vpop.permute.xlu1 %3069  ;;  %5620 = vmatpush3.msra.mxu1 %v2702_v53  ;;  %v2705_v44 = vsel %vm2703_vm1, %v2700_v47, %v2702_v53 }
 0x192   : > { %2742 = vmatprep.subr.mxu0 %v2705_v44  ;;  %5624 = vmatprep.subr.mxu1 %v5842_v37 }
 0x193   : > { %2743 = vmatpush1.msra.mxu0 %v2704_v57  ;;  %5622 = vmatmul.mubr.msk.f32.vlgmr.msra.gmra.mxu1 %vm347_vm14, %v5451_v13  ;;  %v5478_v57 = vld [vmem:[%s6972_s2 + $0xb0] sm:$0xff] }
 0x194   : > { %5625 = vmatpush3.msra.mxu1 %v2892_v58  ;;  %v2885_v59 = vpop.permute.xlu0 %2884  ;;  %5626 = vmatprep.mubr.msk.f32.mxu1 %vm5843_vm0, %v5842_v37 }
 0x195   : > { %v3072_v60 = vpop.permute.xlu1 %3071  ;;  %v2891_v56 = vsel %vm2522_vm12, %v2885_v59, %v2887_v35  ;;  %5629 = vmatprep.subr.mxu1 %v5842_v37  ;;  %5452 = vmatmul.mubr.msk.f32.vlgmr.msra.gmra.mxu0 %vm347_vm14, %v5451_v13 }
 0x196   : > { %v3075_v62 = vsel %vm2343_vm11, %v3070_v55, %v3072_v60  ;;  %2929 = vmatprep.subr.mxu0 %v2891_v56  ;;  %2963 = vmatprep.mubr.f32.mxu0 %v5842_v37 }
 0x197   : > { %5627 = vmatmul.mubr.msk.f32.vlgmr.msra.gmra.mxu1 %vm347_vm14, %v5454_v36 }
 0x198   : > { %5630 = vmatpush3.msra.mxu1 %v3075_v62  ;;  %v2883_v19 = vpop.permute.xlu0 %2882  ;;  %5631 = vmatprep.mubr.msk.f32.mxu1 %vm5843_vm0, %v5842_v37 }
 0x199   : > { %v2890_v1 = vsel %vm2522_vm12, %v2883_v19, %v2885_v59  ;;  %v3253_v24 = vpop.permute.xlu1 %3252  ;;  %5634 = vmatprep.subr.mxu1 %v5842_v37  ;;  %vm7020_vm12 = vmmov %vm7016_vm7 }
 0x19a   : > { %2930 = vmatpush1.msra.mxu0 %v2890_v1  ;;  %v5481_v1 = vld [vmem:[%s6972_s2 + $0xb8] sm:$0xff] }
 0x19b   : > { %5632 = vmatmul.mubr.msk.f32.vlgmr.msra.gmra.mxu1 %vm347_vm14, %v5457_v63  ;;  %5455 = vmatmul.mubr.msk.f32.vlgmr.msra.gmra.mxu0 %vm347_vm14, %v5454_v36 }
 0x19c   : > { %v3068_v2 = vpop.permute.xlu0 %3067  ;;  %5636 = vmatprep.mubr.msk.f32.mxu1 %vm5843_vm0, %v5842_v37  ;;  %3146 = vmatprep.mubr.f32.mxu0 %v5842_v37 }
 0x19d   : > { %v3255_v3 = vpop.permute.xlu1 %3254  ;;  %v3074_v17 = vsel %vm2343_vm11, %v3068_v2, %v3070_v55 }
 0x19e   : > { %v3258_v5 = vsel %vm7011_vm2, %v3253_v24, %v3255_v3  ;;  %3112 = vmatprep.subr.mxu0 %v3074_v17  ;;  %vm7024_vm2 = vmmov %vm7022_vm15 }
 0x19f   : > { %5635 = vmatpush3.msra.mxu1 %v3258_v5 }
 0x1a0   : > { %v3066_v6 = vpop.permute.xlu0 %3065  ;;  %5639 = vmatprep.subr.mxu1 %v5842_v37  ;;  %5637 = vmatmul.mubr.msk.f32.vlgmr.msra.gmra.mxu1 %vm347_vm14, %v5460_v22 }
 0x1a1   : > { %v3073_v10 = vsel %vm2343_vm11, %v3066_v6, %v3068_v2  ;;  %v3436_v8 = vpop.permute.xlu1 %3435  ;;  %5641 = vmatprep.mubr.msk.f32.mxu1 %vm5843_vm0, %v5842_v37  ;;  %vm7019_vm11 = vcmask 326656  }
 0x1a2   : > { %3113 = vmatpush1.msra.mxu0 %v3073_v10  ;;  %vm7021_vm13 = vmmov %vm7019_vm11 }
 0x1a3   : > { %5458 = vmatmul.mubr.msk.f32.vlgmr.msra.gmra.mxu0 %vm347_vm14, %v5457_v63  ;;  %vm7023_vm8 = vmmov %vm7019_vm11 }
 0x1a4   : > { %v3251_v11 = vpop.permute.xlu0 %3250  ;;  %3329 = vmatprep.mubr.f32.mxu0 %v5842_v37 }
 0x1a5   : > { %v3438_v23 = vpop.permute.xlu1 %3437  ;;  %v3257_v41 = vsel %vm7012_vm3, %v3251_v11, %v3253_v24  ;;  %vm7025_vm3 = vcmask 269312  }
 0x1a6   : > { %v3441_v21 = vsel %vm7013_vm4, %v3436_v8, %v3438_v23  ;;  %3295 = vmatprep.subr.mxu0 %v3257_v41  ;;  %vm7026_vm4 = vmmov %vm7024_vm2 }
 0x1a7   : > { %5640 = vmatpush3.msra.mxu1 %v3441_v21 }
 0x1a8   : > { %v3249_v26 = vpop.permute.xlu0 %3248  ;;  %5644 = vmatprep.subr.mxu1 %v5842_v37  ;;  %5642 = vmatmul.mubr.msk.f32.vlgmr.msra.gmra.mxu1 %vm347_vm14, %v5463_v16 }
 0x1a9   : > { %v3256_v29 = vsel %vm7014_vm5, %v3249_v26, %v3251_v11  ;;  %v3619_v12 = vpop.permute.xlu1 %3618  ;;  %5646 = vmatprep.mubr.msk.f32.mxu1 %vm5843_vm0, %v5842_v37  ;;  %vm4338_vm5 = vcmask 261120  }
 0x1aa   : > { %3296 = vmatpush1.msra.mxu0 %v3256_v29  ;;  %v5484_v29 = vld [vmem:[%s6972_s2 + $0xc0] sm:$0xff] }
 0x1ab   : > { %5461 = vmatmul.mubr.msk.f32.vlgmr.msra.gmra.mxu0 %vm347_vm14, %v5460_v22 }
 0x1ac   : > { %v3434_v7 = vpop.permute.xlu0 %3433  ;;  %3512 = vmatprep.mubr.f32.mxu0 %v5842_v37 }
 0x1ad   : > { %v3621_v32 = vpop.permute.xlu1 %3620  ;;  %v3440_v39 = vsel %vm7015_vm6, %v3434_v7, %v3436_v8  ;;  %vm7027_vm6 = vmmov %vm7025_vm3 }
 0x1ae   : > { %v3624_v27 = vsel %vm7016_vm7, %v3619_v12, %v3621_v32  ;;  %3478 = vmatprep.subr.mxu0 %v3440_v39  ;;  %vm7028_vm7 = vmmov %vm7025_vm3 }
 0x1af   : > { %5645 = vmatpush3.msra.mxu1 %v3624_v27 }
 0x1b0   : > { %v3432_v43 = vpop.permute.xlu0 %3431  ;;  %5649 = vmatprep.subr.mxu1 %v5842_v37  ;;  %5647 = vmatmul.mubr.msk.f32.vlgmr.msra.gmra.mxu1 %vm347_vm14, %v5466_v25 }
 0x1b1   : > { %v3439_v14 = vsel %vm7017_vm9, %v3432_v43, %v3434_v7  ;;  %v3802_v28 = vpop.permute.xlu1 %3801  ;;  %5651 = vmatprep.mubr.msk.f32.mxu1 %vm5843_vm0, %v5842_v37  ;;  %vm7029_vm9 = vcmask 252928  }
 0x1b2   : > { %3479 = vmatpush1.msra.mxu0 %v3439_v14 }
 0x1b3   : > { %5464 = vmatmul.mubr.msk.f32.vlgmr.msra.gmra.mxu0 %vm347_vm14, %v5463_v16 }
 0x1b4   : > { %v3617_v46 = vpop.permute.xlu0 %3616  ;;  %3695 = vmatprep.mubr.f32.mxu0 %v5842_v37 }
 0x1b5   : > { %v3804_v31 = vpop.permute.xlu1 %3803  ;;  %v3623_v38 = vsel %vm7018_vm10, %v3617_v46, %v3619_v12  ;;  %vm7030_vm10 = vmmov %vm7029_vm9 }
 0x1b6   : > { %v3807_v45 = vsel %vm7019_vm11, %v3802_v28, %v3804_v31  ;;  %3661 = vmatprep.subr.mxu0 %v3623_v38  ;;  %vm7031_vm11 = vmmov %vm7029_vm9 }
 0x1b7   : > { %5650 = vmatpush3.msra.mxu1 %v3807_v45  ;;  %v5487_v45 = vld [vmem:[%s6972_s2 + $0xc8] sm:$0xff] }
 0x1b8   : > { %v3615_v47 = vpop.permute.xlu0 %3614  ;;  %5652 = vmatmul.mubr.msk.f32.vlgmr.msra.gmra.mxu1 %vm347_vm14, %v5469_v9  ;;  %5654 = vmatprep.subr.mxu1 %v5842_v37 }
 0x1b9   : > { %v3622_v48 = vsel %vm7020_vm12, %v3615_v47, %v3617_v46  ;;  %v3985_v4 = vpop.permute.xlu1 %3984  ;;  %5656 = vmatprep.mubr.msk.f32.mxu1 %vm5843_vm0, %v5842_v37  ;;  %vm7032_vm12 = vcmask 203776  }
 0x1ba   : > { %3662 = vmatpush1.msra.mxu0 %v3622_v48 }
 0x1bb   : > { %5467 = vmatmul.mubr.msk.f32.vlgmr.msra.gmra.mxu0 %vm347_vm14, %v5466_v25 }
 0x1bc   : > { %v3800_v40 = vpop.permute.xlu0 %3799  ;;  %3878 = vmatprep.mubr.f32.mxu0 %v5842_v37 }
 0x1bd   : > { %v3987_v18 = vpop.permute.xlu1 %3986  ;;  %v3806_v34 = vsel %vm7021_vm13, %v3800_v40, %v3802_v28  ;;  %vm7033_vm13 = vmmov %vm7032_vm12 }
 0x1be   : > { %v3990_v61 = vsel %vm7022_vm15, %v3985_v4, %v3987_v18  ;;  %3844 = vmatprep.subr.mxu0 %v3806_v34  ;;  %vm7034_vm15 = vmmov %vm7032_vm12 }
 0x1bf   : > { %5655 = vmatpush3.msra.mxu1 %v3990_v61 }
 0x1c0   : > { %5657 = vmatmul.mubr.msk.f32.vlgmr.msra.gmra.mxu1 %vm347_vm14, %v5472_v33  ;;  %v3798_v49 = vpop.permute.xlu0 %3797  ;;  %5659 = vmatprep.subr.mxu1 %v5842_v37 }
 0x1c1   : > { %v3805_v50 = vsel %vm7023_vm8, %v3798_v49, %v3800_v40  ;;  %v4168_v42 = vpop.permute.xlu1 %4167  ;;  %5661 = vmatprep.mubr.msk.f32.mxu1 %vm5843_vm0, %v5842_v37  ;;  %vm7035_vm8 = vcmask 195584  }
 0x1c2   : > { %3845 = vmatpush1.msra.mxu0 %v3805_v50 }
 0x1c3   : > { %5470 = vmatmul.mubr.msk.f32.vlgmr.msra.gmra.mxu0 %vm347_vm14, %v5469_v9 }
 0x1c4   : > { %v3983_v35 = vpop.permute.xlu0 %3982  ;;  %4061 = vmatprep.mubr.f32.mxu0 %v5842_v37 }
 0x1c5   : > { %v4170_v30 = vpop.permute.xlu1 %4169  ;;  %v3989_v54 = vsel %vm7024_vm2, %v3983_v35, %v3985_v4  ;;  %vm7036_vm2 = vmmov %vm7035_vm8 }
 0x1c6   : > { %v4173_v52 = vsel %vm7025_vm3, %v4168_v42, %v4170_v30  ;;  %4027 = vmatprep.subr.mxu0 %v3989_v54  ;;  %vm7037_vm3 = vmmov %vm7036_vm2 }
 0x1c7   : > { %5660 = vmatpush3.msra.mxu1 %v4173_v52 }
 0x1c8   : > { %5662 = vmatmul.mubr.msk.f32.vlgmr.msra.gmra.mxu1 %vm347_vm14, %v5475_v51  ;;  %v3981_v15 = vpop.permute.xlu0 %3980  ;;  %5664 = vmatprep.subr.mxu1 %v5842_v37 }
 0x1c9   : > { %v3988_v20 = vsel %vm7026_vm4, %v3981_v15, %v3983_v35  ;;  %v4335_v53 = vpop.permute.xlu1 %4334  ;;  %5666 = vmatprep.mubr.msk.f32.mxu1 %vm5843_vm0, %v5842_v37  ;;  %vm7038_vm4 = vcmask 187392  }
 0x1ca   : > { %4028 = vmatpush1.msra.mxu0 %v3988_v20 }
 0x1cb   : > { %5473 = vmatmul.mubr.msk.f32.vlgmr.msra.gmra.mxu0 %vm347_vm14, %v5472_v33 }
 0x1cc   : > { %v4166_v13 = vpop.permute.xlu0 %4165  ;;  %4244 = vmatprep.mubr.f32.mxu0 %v5842_v37 }
 0x1cd   : > { %v4337_v55 = vpop.permute.xlu1 %4336  ;;  %v4172_v44 = vsel %vm7027_vm6, %v4166_v13, %v4168_v42  ;;  %v5490_v42 = vld [vmem:[%s6972_s2 + $0xd0] sm:$0xff]  ;;  %vm7039_vm6 = vmmov %vm7038_vm4 }
 0x1ce   : > { %v4341_v58 = vsel %vm4338_vm5, %v4335_v53, %v4337_v55  ;;  %4210 = vmatprep.subr.mxu0 %v4172_v44 }
 0x1cf   : > { %5665 = vmatpush3.msra.mxu1 %v4341_v58 }
 0x1d0   : > { %5667 = vmatmul.mubr.msk.f32.vlgmr.msra.gmra.mxu1 %vm347_vm14, %v5478_v57  ;;  %v4164_v59 = vpop.permute.xlu0 %4163  ;;  %5669 = vmatprep.subr.mxu1 %v5842_v37 }
 0x1d1   : > { %v4171_v36 = vsel %vm7028_vm7, %v4164_v59, %v4166_v13  ;;  %5671 = vmatprep.mubr.msk.f32.mxu1 %vm5843_vm0, %v5842_v37 }
 0x1d2   : > { %v4519_v60 = vpop.permute.xlu1 %4518  ;;  %4211 = vmatpush1.msra.mxu0 %v4171_v36 }
 0x1d3   : > { %5476 = vmatmul.mubr.msk.f32.vlgmr.msra.gmra.mxu0 %vm347_vm14, %v5475_v51 }
 0x1d4   : > { %v4333_v56 = vpop.permute.xlu0 %4332  ;;  %4412 = vmatprep.mubr.f32.mxu0 %v5842_v37  ;;  %v488_v62 = vpop.f32.mrf.mxu1 }
 0x1d5   : > { %v4340_v19 = vsel %vm4338_vm5, %v4333_v56, %v4335_v53 }
 0x1d6   : > { %v4521_v63 = vpop.permute.xlu1 %4520  ;;  %4378 = vmatprep.subr.mxu0 %v4340_v19  ;;  %v5558_v24 = vpop.f32.mrf.mxu1 }
 0x1d7   : > { %v4524_v2 = vsel %vm7029_vm9, %v4519_v60, %v4521_v63 }
 0x1d8   : > { %5670 = vmatpush3.msra.mxu1 %v4524_v2  ;;  %v4331_v3 = vpop.permute.xlu0 %4330  ;;  %v647_v17 = vpop.f32.mrf.mxu1 }
 0x1d9   : > { %v4339_v22 = vsel %vm4338_vm5, %v4331_v3, %v4333_v56  ;;  %5672 = vmatmul.mubr.msk.f32.vlgmr.msra.gmra.mxu1 %vm347_vm14, %v5481_v1  ;;  %5674 = vmatprep.subr.mxu1 %v5842_v37  ;;  %v648_v5 = vadd.f32 %v647_v17, %v488_v62 }
 0x1da   : > { %4379 = vmatpush1.msra.mxu0 %v4339_v22  ;;  %5676 = vmatprep.mubr.msk.f32.mxu1 %vm5843_vm0, %v5842_v37  ;;  %v5563_v6 = vpop.f32.mrf.mxu1 }
 0x1db   : > { %5479 = vmatmul.mubr.msk.f32.vlgmr.msra.gmra.mxu0 %vm347_vm14, %v5478_v57 }
 0x1dc   : > { %v4517_v10 = vpop.permute.xlu0 %4516  ;;  %4595 = vmatprep.mubr.f32.mxu0 %v5842_v37 }
 0x1dd   : > { %v4523_v8 = vsel %vm7030_vm10, %v4517_v10, %v4519_v60 }
 0x1de   : > { %v4702_v11 = vpop.permute.xlu1 %4701  ;;  %4561 = vmatprep.subr.mxu0 %v4523_v8 }
 0x1e0   : > { %v4515_v23 = vpop.permute.xlu0 %4514  ;;  %v838_v41 = vpop.f32.mrf.mxu1 }
 0x1e1   : > { %v4522_v16 = vsel %vm7031_vm11, %v4515_v23, %v4517_v10  ;;  %v844_v21 = vadd.f32 %v838_v41, %v648_v5 }
 0x1e2   : > { %v4704_v26 = vpop.permute.xlu1 %4703  ;;  %4562 = vmatpush1.msra.mxu0 %v4522_v16  ;;  %v5568_v12 = vpop.f32.mrf.mxu1 }
 0x1e3   : > { %v4707_v7 = vsel %vm7032_vm12, %v4702_v11, %v4704_v26  ;;  %5482 = vmatmul.mubr.msk.f32.vlgmr.msra.gmra.mxu0 %vm347_vm14, %v5481_v1 }
 0x1e4   : > { %5675 = vmatpush3.msra.mxu1 %v4707_v7  ;;  %v4700_v32 = vpop.permute.xlu0 %4699  ;;  %4778 = vmatprep.mubr.f32.mxu0 %v5842_v37  ;;  %v6870_v20 = vpop.f32.mrf.mxu0 }
 0x1e5   : > { %5677 = vmatmul.mubr.msk.f32.vlgmr.msra.gmra.mxu1 %vm347_vm14, %v5484_v29  ;;  %v4706_v39 = vsel %vm7033_vm13, %v4700_v32, %v4702_v11  ;;  %5679 = vmatprep.subr.mxu1 %v5842_v37 }
 0x1e6   : > { %4744 = vmatprep.subr.mxu0 %v4706_v39  ;;  %5681 = vmatprep.mubr.msk.f32.mxu1 %vm5843_vm0, %v5842_v37  ;;  %v6872_v53 = vpop.f32.mrf.mxu0 }
 0x1e8   : > { %v4698_v25 = vpop.permute.xlu0 %4697  ;;  %v1032_v43 = vpop.f32.mrf.mxu1 }
 0x1e9   : > { %v4705_v27 = vsel %vm7034_vm15, %v4698_v25, %v4700_v32  ;;  %v1038_v28 = vadd.f32 %v1032_v43, %v844_v21  ;;  %v6874_v55 = vpop.f32.mrf.mxu0 }
 0x1ea   : > { %v4885_v14 = vpop.permute.xlu1 %4884  ;;  %4745 = vmatpush1.msra.mxu0 %v4705_v27  ;;  %v5573_v46 = vpop.f32.mrf.mxu1 }
 0x1eb   : > { %5485 = vmatmul.mubr.msk.f32.vlgmr.msra.gmra.mxu0 %vm347_vm14, %v5484_v29  ;;  %v6876_v58 = vpop.f32.mrf.mxu0 }
 0x1ec   : > { %v4883_v31 = vpop.permute.xlu0 %4882  ;;  %4961 = vmatprep.mubr.f32.mxu0 %v5842_v37 }
 0x1ed   : > { %v4889_v38 = vsel %vm7035_vm8, %v4883_v31, %v4885_v14  ;;  %v6878_v59 = vpop.f32.mrf.mxu0 }
 0x1ee   : > { %v4887_v9 = vpop.permute.xlu1 %4886  ;;  %4927 = vmatprep.subr.mxu0 %v4889_v38 }
 0x1ef   : > { %v4890_v47 = vsel %vm7036_vm2, %v4885_v14, %v4887_v9  ;;  %v6880_v36 = vpop.f32.mrf.mxu0  ;;  %v5249_v14 = vstv %s5248_s10 }
 0x1f0   : > { %5680 = vmatpush3.msra.mxu1 %v4890_v47  ;;  %v4881_v48 = vpop.permute.xlu0 %4880  ;;  %v1196_v40 = vpop.f32.mrf.mxu1  ;;  %5764 = vrcp.f32 %v5249_v14 }
 0x1f1   : > { %v4888_v4 = vsel %vm7037_vm3, %v4881_v48, %v4883_v31  ;;  %5682 = vmatmul.mubr.msk.f32.vlgmr.msra.gmra.mxu1 %vm347_vm14, %v5487_v45  ;;  %5684 = vmatprep.subr.mxu1 %v5842_v37  ;;  %v1202_v18 = vadd.f32 %v1196_v40, %v1038_v28  ;;  %v6882_v60 = vpop.f32.mrf.mxu0 }
 0x1f2   : > { %4928 = vmatpush1.msra.mxu0 %v4888_v4  ;;  %5686 = vmatprep.mubr.msk.f32.mxu1 %vm5843_vm0, %v5842_v37  ;;  %v5578_v34 = vpop.f32.mrf.mxu1  ;;  %vm7040_vm0 = vmmov %vm7038_vm4 }
 0x1f3   : > { %5488 = vmatmul.mubr.msk.f32.vlgmr.msra.gmra.mxu0 %vm347_vm14, %v5487_v45  ;;  %v6884_v62 = vpop.f32.mrf.mxu0 }
 0x1f4   : > { %v5066_v33 = vpop.permute.xlu0 %5065  ;;  %5144 = vmatprep.mubr.f32.mxu0 %v5842_v37 }
 0x1f6   : > { %v5068_v61 = vpop.permute.xlu1 %5067 }
 0x1f7   : > { %v5072_v49 = vsel %vm7038_vm4, %v5066_v33, %v5068_v61 }
 0x1f8   : > { %5110 = vmatprep.subr.mxu0 %v5072_v49  ;;  %v5064_v50 = vpop.permute.xlu0 %5063  ;;  %v1390_v35 = vpop.f32.mrf.mxu1 }
 0x1f9   : > { %v5071_v30 = vsel %vm7039_vm6, %v5064_v50, %v5066_v33  ;;  %v1396_v54 = vadd.f32 %v1390_v35, %v1202_v18 }
 0x1fa   : > { %v5070_v51 = vpop.permute.xlu1 %5069  ;;  %5111 = vmatpush1.msra.mxu0 %v5071_v30  ;;  %v5583_v52 = vpop.f32.mrf.mxu1 }
 0x1fb   : > { %v5073_v15 = vsel %vm7040_vm0, %v5068_v61, %v5070_v51  ;;  %5491 = vmatmul.mubr.msk.f32.vlgmr.msra.gmra.mxu0 %vm347_vm14, %v5490_v42  ;;  %v6886_v1 = vpop.f32.mrf.mxu0 }
 0x1fc   : > { %5685 = vmatpush3.msra.mxu1 %v5073_v15 }
 0x1fd   : > { %5687 = vmatmul.mubr.msk.f32.vlgmr.msra.gmra.mxu1 %vm347_vm14, %v5490_v42  ;;  %v6888_v24 = vpop.f32.mrf.mxu0  ;;  %v5765_v18 = vpop.eup %5764 }
 0x1fe   : > { %5689 = vpush %v5765_v18 }
 0x204   : > { %v1584_v13 = vpop.f32.mrf.mxu1 }
 0x205   : > { %v1590_v44 = vadd.f32 %v1584_v13, %v1396_v54 }
 0x206   : > { %v5588_v57 = vpop.f32.mrf.mxu1 }
 0x207   : > { %v6890_v3 = vpop.f32.mrf.mxu0 }
 0x209   : > { %v6892_v5 = vpop.f32.mrf.mxu0 }
 0x213   : > { %v6894_v6 = vpop.f32.mrf.mxu0 }
 0x215   : > { %v6896_v8 = vpop.f32.mrf.mxu0 }
 0x218   : > { %v1778_v56 = vpop.f32.mrf.mxu1 }
 0x219   : > { %v1784_v19 = vadd.f32 %v1778_v56, %v1590_v44  ;;  %v6898_v41 = vpop.f32.mrf.mxu0  ;;  %v577_v56 = vadd.f32 %v6874_v55, %v6870_v20 }
 0x21a   : > { %v5593_v63 = vpop.f32.mrf.mxu1 }
 0x21b   : > { %v6900_v16 = vpop.f32.mrf.mxu0 }
 0x224   : > { %v1972_v2 = vpop.f32.mrf.mxu1 }
 0x225   : > { %v1978_v17 = vadd.f32 %v1972_v2, %v1784_v19  ;;  %v6902_v29 = vpop.f32.mrf.mxu0  ;;  %v579_v2 = vadd.f32 %v6876_v58, %v6872_v53 }
 0x226   : > { %v5598_v22 = vpop.f32.mrf.mxu1 }
 0x227   : > { %v6904_v7 = vpop.f32.mrf.mxu0 }
 0x22f   : > { %s5690_s15 = spop %5689 }
 0x230   : > { %v2151_v10 = vpop.f32.mrf.mxu1 }
 0x231   : > { %v2157_v11 = vadd.f32 %v2151_v10, %v1978_v17  ;;  %v6909_v32 = vpop.f32.mrf.mxu0  ;;  %v842_v17 = vadd.f32 %v6878_v59, %v577_v56 }
 0x232   : > { %v5603_v23 = vpop.f32.mrf.mxu1 }
 0x233   : > { %v6912_v25 = vpop.f32.mrf.mxu0  ;;  %v1036_v23 = vadd.f32 %v6882_v60, %v842_v17 }
 0x235   : > { %v1200_v20 = vadd.f32 %v6886_v1, %v1036_v23 }
 0x237   : > { %v1394_v53 = vadd.f32 %v6890_v3, %v1200_v20 }
 0x23b   : > { %v2330_v21 = vpop.f32.mrf.mxu1 }
 0x23c   : > { %v2336_v26 = vadd.f32 %v2330_v21, %v2157_v11  ;;  %v843_v11 = vadd.f32 %v6880_v36, %v579_v2  ;;  %v1588_v36 = vadd.f32 %v6894_v6, %v1394_v53 }
 0x23d   : > { %v5608_v12 = vpop.f32.mrf.mxu1  ;;  %v2259_v46 = vpop.f32.mrf.mxu0 }
 0x23e   : > { %v1037_v12 = vadd.f32 %v6884_v62, %v843_v11  ;;  %v1782_v62 = vadd.f32 %v6898_v41, %v1588_v36 }
 0x23f   : > { %v6914_v9 = vpop.f32.mrf.mxu0 }
 0x248   : > { %v2509_v39 = vpop.f32.mrf.mxu1 }
 0x249   : > { %v2515_v27 = vadd.f32 %v2509_v39, %v2336_v26  ;;  %v2438_v48 = vpop.f32.mrf.mxu0 }
 0x24a   : > { %v5613_v43 = vpop.f32.mrf.mxu1 }
 0x24b   : > { %v2440_v33 = vpop.f32.mrf.mxu0 }
 0x24c   : > { %v2688_v28 = vpop.f32.mrf.mxu1 }
 0x24d   : > { %v2694_v31 = vadd.f32 %v2688_v28, %v2515_v27  ;;  %v1201_v27 = vadd.f32 %v6888_v24, %v1037_v12  ;;  %v1976_v24 = vadd.f32 %v6902_v29, %v1782_v62 }
 0x24e   : > { %v5618_v38 = vpop.f32.mrf.mxu1 }
 0x24f   : > { %v2617_v42 = vpop.f32.mrf.mxu0  ;;  %v1395_v43 = vadd.f32 %v6892_v5, %v1201_v27  ;;  %v2155_v5 = vadd.f32 %v6909_v32, %v1976_v24 }
 0x251   : > { %v2619_v54 = vpop.f32.mrf.mxu0  ;;  %v1589_v28 = vadd.f32 %v6896_v8, %v1395_v43  ;;  %v2334_v18 = vadd.f32 %v2259_v46, %v2155_v5 }
 0x253   : > { %v2849_v45 = vpop.f32.mrf.mxu1  ;;  %v1783_v38 = vadd.f32 %v6900_v16, %v1589_v28 }
 0x254   : > { %v2855_v47 = vadd.f32 %v2849_v45, %v2694_v31 }
 0x255   : > { %v5623_v4 = vpop.f32.mrf.mxu1  ;;  %v2778_v15 = vpop.f32.mrf.mxu0 }
 0x257   : > { %v3036_v40 = vpop.f32.mrf.mxu1  ;;  %v2780_v44 = vpop.f32.mrf.mxu0 }
 0x258   : > { %v3042_v34 = vadd.f32 %v3036_v40, %v2855_v47  ;;  %v1977_v47 = vadd.f32 %v6904_v7, %v1783_v38 }
 0x259   : > { %v5628_v61 = vpop.f32.mrf.mxu1 }
 0x25a   : > { %v2156_v40 = vadd.f32 %v6912_v25, %v1977_v47 }
 0x25b   : > { %v3219_v49 = vpop.f32.mrf.mxu1  ;;  %v2965_v63 = vpop.f32.mrf.mxu0 }
 0x25c   : > { %v3225_v50 = vadd.f32 %v3219_v49, %v3042_v34  ;;  %v2335_v61 = vadd.f32 %v6914_v9, %v2156_v40  ;;  %v2513_v49 = vadd.f32 %v2438_v48, %v2334_v18 }
 0x25d   : > { %v5633_v35 = vpop.f32.mrf.mxu1  ;;  %v2967_v10 = vpop.f32.mrf.mxu0 }
 0x25e   : > { %v2514_v29 = vadd.f32 %v2440_v33, %v2335_v61  ;;  %v2692_v35 = vadd.f32 %v2617_v42, %v2513_v49 }
 0x260   : > { %v3402_v30 = vpop.f32.mrf.mxu1  ;;  %v2693_v7 = vadd.f32 %v2619_v54, %v2514_v29 }
 0x261   : > { %v3408_v51 = vadd.f32 %v3402_v30, %v3225_v50 }
 0x262   : > { %v5638_v52 = vpop.f32.mrf.mxu1 }
 0x263   : > { %v3148_v26 = vpop.f32.mrf.mxu0  ;;  %v2853_v52 = vadd.f32 %v2778_v15, %v2692_v35 }
 0x265   : > { %v3150_v39 = vpop.f32.mrf.mxu0  ;;  %v3040_v25 = vadd.f32 %v2965_v63, %v2853_v52 }
 0x267   : > { %v3223_v17 = vadd.f32 %v3148_v26, %v3040_v25 }
 0x268   : > { %v3585_v13 = vpop.f32.mrf.mxu1 }
 0x269   : > { %v6916_v57 = vadd.f32 %v3585_v13, %v3408_v51 }
 0x26a   : > { %v5643_v19 = vpop.f32.mrf.mxu1 }
 0x26b   : > { %v3331_v59 = vpop.f32.mrf.mxu0  ;;  %v2854_v19 = vadd.f32 %v2780_v44, %v2693_v7 }
 0x26c   : > { %v3406_v48 = vadd.f32 %v3331_v59, %v3223_v17 }
 0x26d   : > { %v3333_v60 = vpop.f32.mrf.mxu0  ;;  %v3041_v2 = vadd.f32 %v2967_v10, %v2854_v19 }
 0x26f   : > { %v3224_v9 = vadd.f32 %v3150_v39, %v3041_v2 }
 0x270   : > { %v6923_v22 = vpop.f32.mrf.mxu1 }
 0x271   : > { %v3407_v42 = vadd.f32 %v3333_v60, %v3224_v9  ;;  %v3774_v54 = vadd.f32 %v6923_v22, %v6916_v57  ;;  %v5260_v9 = vstv %s5690_s15 }
 0x272   : > { %v5648_v21 = vpop.f32.mrf.mxu1 }
 0x273   : > { %v3514_v1 = vpop.f32.mrf.mxu0 }
 0x274   : > { %v3589_v20 = vadd.f32 %v3514_v1, %v3406_v48 }
 0x275   : > { %v3516_v3 = vpop.f32.mrf.mxu0 }
 0x276   : > { %v3590_v27 = vadd.f32 %v3516_v3, %v3407_v42 }
 0x278   : > { %v3951_v55 = vpop.f32.mrf.mxu1 }
 0x279   : > { %v3957_v10 = vadd.f32 %v3951_v55, %v3774_v54  ;;  %v5238_v55 = vstv %s6907_s14 }
 0x27a   : > { %v5653_v58 = vpop.f32.mrf.mxu1 }
 0x27b   : > { %v3697_v6 = vpop.f32.mrf.mxu0 }
 0x27c   : > { %v3772_v15 = vadd.f32 %v3697_v6, %v3589_v20 }
 0x27d   : > { %v3699_v8 = vpop.f32.mrf.mxu0 }
 0x27e   : > { %v3773_v44 = vadd.f32 %v3699_v8, %v3590_v27 }
 0x280   : > { %v4134_v14 = vpop.f32.mrf.mxu1 }
 0x281   : > { %v4140_v59 = vadd.f32 %v4134_v14, %v3957_v10 }
 0x282   : > { %v5658_v31 = vpop.f32.mrf.mxu1 }
 0x283   : > { %v3880_v41 = vpop.f32.mrf.mxu0  ;;  %v5235_v31 = vand.u32 127, %v272_v0  ;;  %v5228_v0 = vpop.permute.xlu0 %5227 }
 0x284   : > { %v3955_v63 = vadd.f32 %v3880_v41, %v3772_v15 }
 0x285   : > { %v3882_v50 = vpop.f32.mrf.mxu0  ;;  %v5236_v5 = vadd.s32 128, %v5235_v31  ;;  %v5237_v18 = vadd.s32 256, %v5235_v31  ;;  %vm5239_vm14 = vcmp.lt.s32.totalorder %v5235_v31, %v5238_v55 }
 0x286   : > { %v3956_v26 = vadd.f32 %v3882_v50, %v3773_v44  ;;  %v5493_v7 = vsel %vm5239_vm14, 1.0, %v5842_v37 }
 0x287   : > { %vm5240_vm7 = vcmp.lt.s32.totalorder %v5236_v5, %v5238_v55  ;;  %vm5241_vm9 = vcmp.lt.s32.totalorder %v5237_v18, %v5238_v55 }
 0x288   : > { %v4317_v45 = vpop.f32.mrf.mxu1  ;;  %v5494_v52 = vsel %vm5240_vm7, 1.0, %v5842_v37 }
 0x289   : > { %v4323_v1 = vadd.f32 %v4317_v45, %v4140_v59  ;;  %v5284_v59 = vstv %s5281_s26 }
 0x28a   : > { %v5663_v4 = vpop.f32.mrf.mxu1 }
 0x28b   : > { %v4063_v30 = vpop.f32.mrf.mxu0 }
 0x28c   : > { %v4138_v43 = vadd.f32 %v4063_v30, %v3955_v63 }
 0x28d   : > { %v4065_v32 = vpop.f32.mrf.mxu0 }
 0x28e   : > { %v4139_v36 = vadd.f32 %v4065_v32, %v3956_v26  ;;  %v5495_v32 = vsel %vm5241_vm9, 1.0, %v5842_v37 }
 0x290   : > { %v4485_v34 = vpop.f32.mrf.mxu1 }
 0x291   : > { %v4491_v24 = vadd.f32 %v4485_v34, %v4323_v1 }
 0x292   : > { %v5668_v16 = vpop.f32.mrf.mxu1 }
 0x293   : > { %v4246_v56 = vpop.f32.mrf.mxu0 }
 0x294   : > { %v4321_v28 = vadd.f32 %v4246_v56, %v4138_v43 }
 0x295   : > { %v4248_v46 = vpop.f32.mrf.mxu0 }
 0x296   : > { %v4322_v38 = vadd.f32 %v4248_v46, %v4139_v36 }
 0x299   : > { %v4668_v51 = vpop.f32.mrf.mxu1 }
 0x29a   : > { %v4674_v4 = vadd.f32 %v4668_v51, %v4491_v24 }
 0x29b   : > { %v5673_v13 = vpop.f32.mrf.mxu1  ;;  %v4414_v11 = vpop.f32.mrf.mxu0 }
 0x29c   : > { %v4489_v57 = vadd.f32 %v4414_v11, %v4321_v28 }
 0x29d   : > { %v4416_v21 = vpop.f32.mrf.mxu0 }
 0x29e   : > { %v4490_v3 = vadd.f32 %v4416_v21, %v4322_v38 }
 0x2a3   : > { %v4597_v33 = vpop.f32.mrf.mxu0 }
 0x2a4   : > { %v4672_v47 = vadd.f32 %v4597_v33, %v4489_v57 }
 0x2a5   : > { %v4851_v23 = vpop.f32.mrf.mxu1  ;;  %v4599_v53 = vpop.f32.mrf.mxu0 }
 0x2a6   : > { %v4673_v6 = vadd.f32 %v4599_v53, %v4490_v3  ;;  %v4857_v8 = vadd.f32 %v4851_v23, %v4674_v4 }
 0x2a7   : > { %v5678_v12 = vpop.f32.mrf.mxu1 }
 0x2ab   : > { %v4780_v58 = vpop.f32.mrf.mxu0 }
 0x2ac   : > { %v4855_v40 = vadd.f32 %v4780_v58, %v4672_v47 }
 0x2ad   : > { %v4782_v62 = vpop.f32.mrf.mxu0 }
 0x2ae   : > { %v4856_v41 = vadd.f32 %v4782_v62, %v4673_v6 }
 0x2b1   : > { %v5034_v39 = vpop.f32.mrf.mxu1 }
 0x2b2   : > { %v5040_v45 = vadd.f32 %v5034_v39, %v4857_v8 }
 0x2b3   : > { %v5683_v60 = vpop.f32.mrf.mxu1  ;;  %v4963_v22 = vpop.f32.mrf.mxu0 }
 0x2b4   : > { %v5038_v61 = vadd.f32 %v4963_v22, %v4855_v40 }
 0x2b5   : > { %v4965_v14 = vpop.f32.mrf.mxu0 }
 0x2b6   : > { %v5039_v16 = vadd.f32 %v4965_v14, %v4856_v41 }
 0x2bb   : > { %v5146_v49 = vpop.f32.mrf.mxu0 }
 0x2bc   : > { %v5221_v50 = vadd.f32 %v5146_v49, %v5038_v61 }
 0x2bd   : > { %v5148_v34 = vpop.f32.mrf.mxu0  ;;  %v5217_v29 = vpop.f32.mrf.mxu1 }
 0x2be   : > { %v5222_v35 = vadd.f32 %v5148_v34, %v5039_v16  ;;  %v5223_v30 = vadd.f32 %v5217_v29, %v5040_v45  ;;  %v5230_v51 = vadd.f32 %v5228_v0, %v5221_v50 }
 0x2bf   : > { %v5688_v13 = vpop.f32.mrf.mxu1 }
 0x2c0   : > { %v5231_v56 = vadd.f32 %v5228_v0, %v5222_v35  ;;  %v5232_v19 = vadd.f32 %v5228_v0, %v5223_v30  ;;  %v5252_v25 = vmul.f32 %v5493_v7, %v5230_v51 }
 0x2c2   : > { %v5253_v46 = vmul.f32 %v5494_v52, %v5231_v56  ;;  %v5254_v2 = vmul.f32 %v5495_v32, %v5232_v19 }
 0x2c4   : > { %v5255_v17 = vadd.f32 %v5253_v46, %v5252_v25  ;;  %v5256_v11 = vsel %vm2703_vm1, %v5254_v2, 0.0 }
 0x2c6   : > { %v5257_v23 = vadd.f32 %v5256_v11, %v5255_v17 }
 0x2c8   : > { %5258 = vadd.xlane.f32.xlu1 %v5257_v23 }
 0x351   : > { %v5259_v48 = vpop.xlane.xlu1 %5258 }
 0x352   : > { %v5261_v21 = vmul.f32 %v5260_v9, %v5259_v48 }
 0x354   : > { %v5262_v12 = vsub.f32 %v5230_v51, %v5261_v21  ;;  %v5263_v33 = vsub.f32 %v5231_v56, %v5261_v21  ;;  %v5264_v42 = vsub.f32 %v5232_v19, %v5261_v21 }
 0x356   : > { %v5265_v20 = vmul.f32 %v5493_v7, %v5262_v12  ;;  %v5266_v37 = vmul.f32 %v5494_v52, %v5263_v33  ;;  %v5267_v27 = vmul.f32 %v5495_v32, %v5264_v42 }
 0x358   : > { %v5268_v54 = vmul.f32 %v5265_v20, %v5265_v20  ;;  %v5269_v15 = vmul.f32 %v5266_v37, %v5266_v37  ;;  %v5270_v53 = vmul.f32 %v5267_v27, %v5267_v27 }
 0x35a   : > { %v5271_v44 = vadd.f32 %v5269_v15, %v5268_v54  ;;  %v5272_v63 = vsel %vm2703_vm1, %v5270_v53, 0.0 }
 0x35c   : > { %v5273_v58 = vadd.f32 %v5272_v63, %v5271_v44 }
 0x35e   : > { %5274 = vadd.xlane.f32.xlu0 %v5273_v58 }
 0x3e7   : > { %v5275_v10 = vpop.xlane.xlu0 %5274 }
 0x3e8   : > { %v5276_v26 = vmul.f32 %v5275_v10, %v5260_v9 }
 0x3ea   : > { %v5277_v43 = vadd.f32 1e-05, %v5276_v26 }
 0x3ec   : > { %5766 = vrsqrt.f32 %v5277_v43 }
 0x3f9   : > { %v5767_v39 = vpop.eup %5766 }
 0x3fa   : > { %v5279_v36 = vmul.f32 %v5767_v39, %v5262_v12  ;;  %v5280_v28 = vmul.f32 %v5767_v39, %v5263_v33  ;;  %5292 = sbr.rel (%p5496_p12) target bundleno = 1024 (0x400), region = 44 }
 0x3fc   : > { %vm5282_vm10 = vcmp.ge.f32.partialorder %v5279_v36, 0.0  ;;  %vm5283_vm11 = vcmp.ge.f32.partialorder %v5280_v28, 0.0  ;;  %v5285_v62 = vmul.f32 %v5284_v59, %v5279_v36  ;;  %v5286_v60 = vmul.f32 %v5284_v59, %v5280_v28 }
 0x3fe   : > { %v5287_v31 = vsel %vm5282_vm10, %v5279_v36, %v5285_v62  ;;  %v5288_v1 = vsel %vm5283_vm11, %v5280_v28, %v5286_v60 }
 0x3ff   : > { %5293 = vst [vmem:[%s5998_s25] sm:$0xff] %v5287_v31 }
 0x400 PF: > { %p5497_p13 = scmp.le.s32.totalorder %s5809_s0, 0 }
 0x401   : > { %s5854_s9 = smov (!%p5497_p13), 32  }
 0x402   : > { %5297 = sbr.rel (%p5497_p13) target bundleno = 1152 (0x480), region = 48 }
 0x407   : > { %5300 = vrot.lane.b32.xlu0 %v5287_v31, %s5854_s9 }
 0x40b   : > { %5302 = vrot.lane.b32.xlu0 %v5288_v1, %s5854_s9 }
 0x479   : > { %v5301_v38 = vpop.permute.xlu0 %5300 }
 0x47d   : > { %v5303_v57 = vpop.permute.xlu0 %5302 }
 0x47e   : > { %v5304_v22 = vsel %vm4338_vm5, %v5301_v38, %v5303_v57 }
 0x47f   : > { %5306 = vst [vmem:[%s5998_s25] sm:$0xff] %v5304_v22 }
 0x480 PF: > { %s23_s30 = sadd.s32 1, %s5821_s30   ;;  %s7041_s28 = smov %s5813_s29 }
 0x481   : > { %p20_p0 = scmp.ge.s32.totalorder %s23_s30, 34   ;;  %s7042_s0 = smov %s5817_s5 }
 0x482   : > { %s7043_s29 = smov %s7046_s7  ;;  %s7044_s5 = smov %s7050_s8 }
 0x483   :  { %22 = sbr.rel (!%p20_p0) target bundleno = 18 (0x12), region = 111 }

</bundles_post_ra>
